<compile_context>
chip_gen: v7x
topology: tpu7x:2x2x1
jax: 0.10.0
libtpu: 0.0.40
codegen_flags: <defaults>
</compile_context>

<pallas_src>
import functools

import jax
import jax.numpy as jnp
from jax import lax
from jax.experimental import pallas as pl
from jax.experimental.pallas import tpu as pltpu

NEG_INF = -1e30  # used instead of -inf to avoid inf-inf NaN corner cases


def _round_up(x, m):
    return (x + m - 1) // m * m


def _vmem_budget_bytes():
    """~75% of physical VMEM, queried per chip (v7x = 64 MiB is the smallest)."""
    try:
        cap = int(pltpu.get_tpu_info().vmem_capacity_bytes)
    except Exception:  # query unavailable -> assume the smallest generation
        cap = 64 << 20
    return (cap * 3) // 4


# ----------------------------- Pallas kernel ---------------------------------
def fusion_ce_kernel(tpool_ref, ipool_ref, gamma_t_ref, gamma_i_ref,
                     beta_t_ref, beta_i_ref, w1t_ref, w1i_ref, b1_ref,
                     w2_ref, b2_ref, labels_ref,
                     logits_ref, rowloss_ref, *, batch, tile_b, d_fused):
    """One batch tile of: LayerNorm -> Linear -> ReLU -> [Dropout] -> Linear + CE.

    tpool/ipool     : [TB, Ht] / [TB, Hi] f32 pooled encoder features (batch-tiled)
    gamma_*/beta_*  : [1, Ht] / [1, Hi] f32 LayerNorm affine, split at the concat
                      boundary (Df = Ht + Hi), VMEM-resident
    w1t / w1i / b1  : [Ht, I] / [Hi, I] bf16 and [1, I] f32, VMEM-resident
    w2 / b2         : [I, Lp] bf16 / [1, Lp] f32 (pad cols biased to -1e30)
    labels          : [TB, 1] int32
    logits          : [TB, Lp] out (lane-dense, caller slices off pad columns)
    rowloss         : [TB, 1]  f32 out (per-row CE, zero for batch-padding rows)
    """
    xt = tpool_ref[...].astype(jnp.float32)
    xi = ipool_ref[...].astype(jnp.float32)

    # --- nn.LayerNorm(Df) over the fused feature, WITHOUT materializing the
    #     concat: accumulate the moments across the two halves (eps=1e-5).
    inv_df = 1.0 / d_fused
    mean = (jnp.sum(xt, axis=-1, keepdims=True)
            + jnp.sum(xi, axis=-1, keepdims=True)) * inv_df
    ct = xt - mean
    ci = xi - mean
    var = (jnp.sum(ct * ct, axis=-1, keepdims=True)
           + jnp.sum(ci * ci, axis=-1, keepdims=True)) * inv_df
    inv_std = lax.rsqrt(var + 1e-5)
    xnt = ct * inv_std * gamma_t_ref[...] + beta_t_ref[...]
    xni = ci * inv_std * gamma_i_ref[...] + beta_i_ref[...]

    # --- nn.Linear(Df, intermediate) + ReLU: matmul split at the concat
    #     boundary, bf16 MXU inputs, f32 accumulation ---
    h = (jnp.dot(xnt.astype(jnp.bfloat16), w1t_ref[...],
                 preferred_element_type=jnp.float32)
         + jnp.dot(xni.astype(jnp.bfloat16), w1i_ref[...],
                   preferred_element_type=jnp.float32)
         + b1_ref[...])
    h = jnp.maximum(h, 0.0)

    # TODO(synk): nn.Dropout(0.5) is identity in eval mode; training-mode RNG mask
    #             (pltpu.prng_random_bits) intentionally not applied here.

    # --- nn.Linear(intermediate, num_labels), lane-padded to Lp columns ---
    logits = jnp.dot(h.astype(jnp.bfloat16), w2_ref[...],
                     preferred_element_type=jnp.float32) + b2_ref[...]
    logits_ref[...] = logits.astype(logits_ref.dtype)

    # --- nn.CrossEntropyLoss: per-row (logsumexp - picked_logit) ---
    # Padded label columns carry logit -1e30 -> never the max, exp underflows to 0.
    m = jnp.max(logits, axis=-1, keepdims=True)
    lse = jnp.log(jnp.sum(jnp.exp(logits - m), axis=-1, keepdims=True)) + m
    tb, lp = logits.shape
    col = lax.broadcasted_iota(jnp.int32, (tb, lp), 1)
    picked = jnp.sum(jnp.where(col == labels_ref[...], logits, 0.0),
                     axis=-1, keepdims=True)
    # Zero out batch-padding rows.
    row = pl.program_id(0) * tile_b + lax.broadcasted_iota(jnp.int32, (tb, 1), 0)
    valid = (row < batch).astype(jnp.float32)
    rowloss_ref[...] = valid * (lse - picked)


# --------------------------- pallas_call wrapper ------------------------------
def fusion_head_pallas(text_pool, image_pool, gamma, beta, w1, b1, w2, b2,
                       labels, *, tile_b=512, logits_dtype=jnp.float32):
    """Fusion head + CE.  Returns (logits [B, L], mean_loss scalar f32).

    logits_dtype=jnp.bfloat16 halves the logits HBM writeback (useful on v5e /
    when only the loss is consumed); default f32 matches the PyTorch module.
    """
    B, Ht = text_pool.shape
    _, Hi = image_pool.shape
    Df = Ht + Hi
    I = w1.shape[1]
    L = w2.shape[1]

    # Lane-dense logits: pad num_labels to a multiple of 128.  Pad columns get
    # zero weights and a -1e30 bias so softmax / CE are unchanged.
    Lp = _round_up(L, 128)
    w2p = jnp.pad(w2, ((0, 0), (0, Lp - L)))
    b2p = jnp.pad(b2, ((0, 0), (0, Lp - L)), constant_values=NEG_INF)

    # Split params at the concat boundary so the kernel never concatenates.
    gamma_t, gamma_i = gamma[:, :Ht], gamma[:, Ht:]
    beta_t, beta_i = beta[:, :Ht], beta[:, Ht:]
    w1t = w1[:Ht, :].astype(jnp.bfloat16)
    w1i = w1[Ht:, :].astype(jnp.bfloat16)
    w2b = w2p.astype(jnp.bfloat16)

    logits_isize = jnp.dtype(logits_dtype).itemsize
    budget = _vmem_budget_bytes()

    def est_bytes(tb, resident_bufs):
        # double-buffered batch-tiled streams + resident weight buffers
        tiled_bytes = 2 * tb * ((Ht + Hi + 1 + 1) * 4 + Lp * logits_isize)
        weight_bytes = resident_bufs * (Df * 8 + Df * I * 2 + I * 4
                                        + I * Lp * 2 + Lp * 4)
        return tiled_bytes + weight_bytes

    # Batch tiling: large TB (default 512) fills the 256x256 MXU M dimension on
    # v6e/v7x and amortizes per-grid-step overhead; shrink only if a tile would
    # not fit the VMEM budget even with double-buffered weights.
    TB = _round_up(min(tile_b, _round_up(B, 8)), 8)
    while TB > 8 and est_bytes(TB, 2) > budget:
        TB = _round_up(TB // 2, 8)

    Bp = _round_up(B, TB)
    nB = Bp // TB
    pad_b = Bp - B
    text_pool = jnp.pad(text_pool, ((0, pad_b), (0, 0)))
    image_pool = jnp.pad(image_pool, ((0, pad_b), (0, 0)))
    labels2d = jnp.pad(labels.astype(jnp.int32), (0, pad_b)).reshape(Bp, 1)

    kernel = functools.partial(fusion_ce_kernel, batch=B, tile_b=TB, d_fused=Df)
    operands = (text_pool, image_pool, gamma_t, gamma_i, beta_t, beta_i,
                w1t, w1i, b1, w2b, b2p, labels2d)
    out_shape = (jax.ShapeDtypeStruct((Bp, Lp), logits_dtype),
                 jax.ShapeDtypeStruct((Bp, 1), jnp.float32))

    def build(single_buffer, semantics):
        tiled = lambda shape: pl.BlockSpec(shape, lambda i: (i, 0))
        if single_buffer:
            # Constant index_map -> DMA'd once; single buffer halves resident VMEM.
            resident = lambda shape: pl.BlockSpec(shape, lambda i: (0, 0),
                                                  pipeline_mode=pl.Buffered(1))
        else:
            resident = lambda shape: pl.BlockSpec(shape, lambda i: (0, 0))

        grid_spec = pltpu.PrefetchScalarGridSpec(
            num_scalar_prefetch=0,
            grid=(nB,),
            in_specs=[
                tiled((TB, Ht)),          # text pooler output (batch tile)
                tiled((TB, Hi)),          # image pooler output (batch tile)
                resident((1, Ht)),        # LayerNorm gamma (text half)
                resident((1, Hi)),        # LayerNorm gamma (image half)
                resident((1, Ht)),        # LayerNorm beta (text half)
                resident((1, Hi)),        # LayerNorm beta (image half)
                resident((Ht, I)),        # fc1 weight, text half (bf16)
                resident((Hi, I)),        # fc1 weight, image half (bf16)
                resident((1, I)),         # fc1 bias
                resident((I, Lp)),        # fc2 weight (bf16, lane-padded)
                resident((1, Lp)),        # fc2 bias (pad cols = -1e30)
                tiled((TB, 1)),           # labels
            ],
            out_specs=[
                tiled((TB, Lp)),          # logits (lane-dense)
                tiled((TB, 1)),           # per-row CE (summed in the wrapper)
            ],
        )

        cp_kwargs = dict(dimension_semantics=(semantics,))
        need = est_bytes(TB, 1 if single_buffer else 2)
        if need > (12 << 20):
            # Raise the scoped limit only when needed; never above ~75% of the
            # chip's physical VMEM (v7x = 64 MiB physical -> ~48 MiB budget).
            cp_kwargs["vmem_limit_bytes"] = int(
                min(budget, max(32 << 20, need + (need >> 2))))
        return pl.pallas_call(
            kernel, grid_spec=grid_spec, out_shape=out_shape,
            compiler_params=pltpu.CompilerParams(**cp_kwargs))

    # Preference order: (single-buffered weights, explicit core-parallel batch
    # split for v7x's two TensorCores) -> (single-buffered, parallel) ->
    # (default double-buffered, parallel) as a compatibility fallback.
    attempts = []
    if nB >= 2:
        attempts.append((True, pltpu.CORE_PARALLEL))
    attempts.append((True, "parallel"))
    attempts.append((False, "parallel"))

    last_err = None
    for single_buffer, semantics in attempts:
        try:
            logits_p, row_losses = build(single_buffer, semantics)(*operands)
            break
        except Exception as e:  # unsupported pipeline_mode / core-parallel, etc.
            last_err = e
    else:
        raise last_err

    logits = logits_p[:B, :L].astype(jnp.float32)
    loss = jnp.sum(row_losses) / jnp.float32(B)   # mean CE (padded rows are 0)
    return logits, loss


# ----------------------- Encoder stubs (plain-JAX glue) ----------------------
def text_pooler_stub(input_ids, emb_table, pool_w, pool_b):
    """RoBERTa-style pooler: first-token embedding -> dense -> tanh."""
    tok = jnp.take(emb_table, input_ids, axis=0)            # [B, S, Ht]
    cls = tok[:, 0, :]                                       # [B, Ht]
    return jnp.tanh(cls @ pool_w + pool_b)                   # [B, Ht]


def image_pooler_stub(pixel_values, patch_w, pool_w, pool_b, patch=16):
    """ViT-style pooler stub: 16x16 patch embed -> first patch -> dense -> tanh."""
    B, C, H, W = pixel_values.shape
    nh, nw = H // patch, W // patch
    x = pixel_values.reshape(B, C, nh, patch, nw, patch)
    x = x.transpose(0, 2, 4, 1, 3, 5).reshape(B, nh * nw, C * patch * patch)
    patches = x @ patch_w                                    # [B, P, Hi]
    return jnp.tanh(patches[:, 0, :] @ pool_w + pool_b)      # [B, Hi]


# --------------------------------- Driver ------------------------------------
def multimodal_vqa_forward(params, input_ids, pixel_values, labels):
    text_pool = text_pooler_stub(input_ids, params["emb"], params["t_pool_w"],
                                 params["t_pool_b"])
    image_pool = image_pooler_stub(pixel_values, params["patch_w"],
                                   params["i_pool_w"], params["i_pool_b"])
    logits, loss = fusion_head_pallas(
        text_pool, image_pool,
        params["ln_gamma"], params["ln_beta"],
        params["fc1_w"], params["fc1_b"],
        params["fc2_w"], params["fc2_b"],
        labels)
    return {"logits": logits, "loss": loss}


def init_params(key, vocab, Ht, Hi, intermediate, num_labels, patch_dim):
    ks = jax.random.split(key, 6)
    Df = Ht + Hi
    scale = 0.02
    return {
        "emb":      scale * jax.random.normal(ks[0], (vocab, Ht), jnp.float32),
        "t_pool_w": scale * jax.random.normal(ks[1], (Ht, Ht), jnp.float32),
        "t_pool_b": jnp.full((Ht,), 0.01, jnp.float32),
        "patch_w":  scale * jax.random.normal(ks[2], (patch_dim, Hi), jnp.float32),
        "i_pool_w": scale * jax.random.normal(ks[3], (Hi, Hi), jnp.float32),
        "i_pool_b": jnp.full((Hi,), 0.01, jnp.float32),
        "ln_gamma": jnp.ones((1, Df), jnp.float32),
        "ln_beta":  jnp.zeros((1, Df), jnp.float32),
        "fc1_w":    scale * jax.random.normal(ks[4], (Df, intermediate), jnp.float32),
        "fc1_b":    jnp.full((1, intermediate), 0.01, jnp.float32),
        "fc2_w":    scale * jax.random.normal(ks[5], (intermediate, num_labels), jnp.float32),
        "fc2_b":    jnp.full((1, num_labels), 0.01, jnp.float32),
    }


if __name__ == "__main__":
    # Small shapes consistent with the module's roles.
    B, S, VOCAB = 2, 8, 100
    HT, HI = 64, 64              # stand-ins for roberta/vit hidden sizes
    INTERMEDIATE = 128           # stand-in for intermediate_dim=512
    NUM_LABELS = 16              # stand-in for num_labels=582 (lane-padded to 128)
    C, IMG, PATCH = 3, 32, 16
    PATCH_DIM = C * PATCH * PATCH

    key = jax.random.PRNGKey(0)
    kp, ki, kx, kl = jax.random.split(key, 4)

    params = init_params(kp, VOCAB, HT, HI, INTERMEDIATE, NUM_LABELS, PATCH_DIM)
    input_ids = jax.random.randint(ki, (B, S), 0, VOCAB, dtype=jnp.int32)
    pixel_values = jax.random.normal(kx, (B, C, IMG, IMG), jnp.float32)
    labels = jax.random.randint(kl, (B,), 0, NUM_LABELS, dtype=jnp.int32)

    out = multimodal_vqa_forward(params, input_ids, pixel_values, labels)
    jax.block_until_ready(out["logits"])
    jax.block_until_ready(out["loss"])

    assert out["logits"].shape == (B, NUM_LABELS)
    assert out["loss"].shape == ()
    assert bool(jnp.isfinite(out["loss"]))
    print("KERNEL_OK")
</pallas_src>

<mosaic_0001>
module attributes {stable_mosaic.version = 11 : i64} {
  func.func @fusion_ce_kernel(%arg0: i32, %arg1: memref<8x64xf32, #tpu.memory_space<vmem>>, %arg2: memref<8x64xf32, #tpu.memory_space<vmem>>, %arg3: memref<1x64xf32, #tpu.memory_space<vmem>>, %arg4: memref<1x64xf32, #tpu.memory_space<vmem>>, %arg5: memref<1x64xf32, #tpu.memory_space<vmem>>, %arg6: memref<1x64xf32, #tpu.memory_space<vmem>>, %arg7: memref<64x128xbf16, #tpu.memory_space<vmem>>, %arg8: memref<64x128xbf16, #tpu.memory_space<vmem>>, %arg9: memref<1x128xf32, #tpu.memory_space<vmem>>, %arg10: memref<128x128xbf16, #tpu.memory_space<vmem>>, %arg11: memref<1x128xf32, #tpu.memory_space<vmem>>, %arg12: memref<8x1xi32, #tpu.memory_space<vmem>>, %arg13: memref<8x128xf32, #tpu.memory_space<vmem>>, %arg14: memref<8x1xf32, #tpu.memory_space<vmem>>) attributes {dimension_semantics = [#tpu.dimension_semantics<parallel>], iteration_bounds = array<i64: 1>, scalar_prefetch = 0 : i64, scratch_operands = 0 : i64, tpu.core_type = #tpu.core_type<tc>, window_params = [{transform_indices = @transform_0, window_bounds = array<i64: 8, 64>}, {transform_indices = @transform_1, window_bounds = array<i64: 8, 64>}, {pipeline_mode = #tpu.pipeline_mode<synchronous>, transform_indices = @transform_2, window_bounds = array<i64: 1, 64>}, {pipeline_mode = #tpu.pipeline_mode<synchronous>, transform_indices = @transform_3, window_bounds = array<i64: 1, 64>}, {pipeline_mode = #tpu.pipeline_mode<synchronous>, transform_indices = @transform_4, window_bounds = array<i64: 1, 64>}, {pipeline_mode = #tpu.pipeline_mode<synchronous>, transform_indices = @transform_5, window_bounds = array<i64: 1, 64>}, {pipeline_mode = #tpu.pipeline_mode<synchronous>, transform_indices = @transform_6, window_bounds = array<i64: 64, 128>}, {pipeline_mode = #tpu.pipeline_mode<synchronous>, transform_indices = @transform_7, window_bounds = array<i64: 64, 128>}, {pipeline_mode = #tpu.pipeline_mode<synchronous>, transform_indices = @transform_8, window_bounds = array<i64: 1, 128>}, {pipeline_mode = #tpu.pipeline_mode<synchronous>, transform_indices = @transform_9, window_bounds = array<i64: 128, 128>}, {pipeline_mode = #tpu.pipeline_mode<synchronous>, transform_indices = @transform_10, window_bounds = array<i64: 1, 128>}, {transform_indices = @transform_11, window_bounds = array<i64: 8, 1>}, {transform_indices = @transform_12, window_bounds = array<i64: 8, 128>}, {transform_indices = @transform_13, window_bounds = array<i64: 8, 1>}]} {
    %c0 = arith.constant 0 : index
    %c0_0 = arith.constant 0 : index
    %0 = vector.load %arg1[%c0, %c0_0] : memref<8x64xf32, #tpu.memory_space<vmem>>, vector<8x64xf32>
    %c0_1 = arith.constant 0 : index
    %c0_2 = arith.constant 0 : index
    %1 = vector.load %arg2[%c0_1, %c0_2] : memref<8x64xf32, #tpu.memory_space<vmem>>, vector<8x64xf32>
    %cst = arith.constant dense<0.000000e+00> : vector<8xf32>
    %2 = vector.multi_reduction <add>, %0, %cst [1] : vector<8x64xf32> to vector<8xf32>
    %3 = vector.shape_cast %2 : vector<8xf32> to vector<8x1xf32>
    %cst_3 = arith.constant dense<0.000000e+00> : vector<8xf32>
    %4 = vector.multi_reduction <add>, %1, %cst_3 [1] : vector<8x64xf32> to vector<8xf32>
    %5 = vector.shape_cast %4 : vector<8xf32> to vector<8x1xf32>
    %6 = arith.addf %3, %5 : vector<8x1xf32>
    %cst_4 = arith.constant 7.812500e-03 : f32
    %7 = vector.broadcast %cst_4 : f32 to vector<8x1xf32>
    %8 = arith.mulf %6, %7 : vector<8x1xf32>
    %9 = vector.broadcast %8 : vector<8x1xf32> to vector<8x64xf32>
    %10 = arith.subf %0, %9 : vector<8x64xf32>
    %11 = vector.broadcast %8 : vector<8x1xf32> to vector<8x64xf32>
    %12 = arith.subf %1, %11 : vector<8x64xf32>
    %13 = arith.mulf %10, %10 : vector<8x64xf32>
    %cst_5 = arith.constant dense<0.000000e+00> : vector<8xf32>
    %14 = vector.multi_reduction <add>, %13, %cst_5 [1] : vector<8x64xf32> to vector<8xf32>
    %15 = vector.shape_cast %14 : vector<8xf32> to vector<8x1xf32>
    %16 = arith.mulf %12, %12 : vector<8x64xf32>
    %cst_6 = arith.constant dense<0.000000e+00> : vector<8xf32>
    %17 = vector.multi_reduction <add>, %16, %cst_6 [1] : vector<8x64xf32> to vector<8xf32>
    %18 = vector.shape_cast %17 : vector<8xf32> to vector<8x1xf32>
    %19 = arith.addf %15, %18 : vector<8x1xf32>
    %cst_7 = arith.constant 7.812500e-03 : f32
    %20 = vector.broadcast %cst_7 : f32 to vector<8x1xf32>
    %21 = arith.mulf %19, %20 : vector<8x1xf32>
    %cst_8 = arith.constant 9.99999974E-6 : f32
    %22 = vector.broadcast %cst_8 : f32 to vector<8x1xf32>
    %23 = arith.addf %21, %22 : vector<8x1xf32>
    %24 = math.rsqrt %23 : vector<8x1xf32>
    %25 = vector.broadcast %24 : vector<8x1xf32> to vector<8x64xf32>
    %26 = arith.mulf %10, %25 : vector<8x64xf32>
    %c0_9 = arith.constant 0 : index
    %c0_10 = arith.constant 0 : index
    %27 = vector.load %arg3[%c0_9, %c0_10] : memref<1x64xf32, #tpu.memory_space<vmem>>, vector<1x64xf32>
    %28 = vector.broadcast %27 : vector<1x64xf32> to vector<8x64xf32>
    %29 = arith.mulf %26, %28 : vector<8x64xf32>
    %c0_11 = arith.constant 0 : index
    %c0_12 = arith.constant 0 : index
    %30 = vector.load %arg5[%c0_11, %c0_12] : memref<1x64xf32, #tpu.memory_space<vmem>>, vector<1x64xf32>
    %31 = vector.broadcast %30 : vector<1x64xf32> to vector<8x64xf32>
    %32 = arith.addf %29, %31 : vector<8x64xf32>
    %33 = vector.broadcast %24 : vector<8x1xf32> to vector<8x64xf32>
    %34 = arith.mulf %12, %33 : vector<8x64xf32>
    %c0_13 = arith.constant 0 : index
    %c0_14 = arith.constant 0 : index
    %35 = vector.load %arg4[%c0_13, %c0_14] : memref<1x64xf32, #tpu.memory_space<vmem>>, vector<1x64xf32>
    %36 = vector.broadcast %35 : vector<1x64xf32> to vector<8x64xf32>
    %37 = arith.mulf %34, %36 : vector<8x64xf32>
    %c0_15 = arith.constant 0 : index
    %c0_16 = arith.constant 0 : index
    %38 = vector.load %arg6[%c0_15, %c0_16] : memref<1x64xf32, #tpu.memory_space<vmem>>, vector<1x64xf32>
    %39 = vector.broadcast %38 : vector<1x64xf32> to vector<8x64xf32>
    %40 = arith.addf %37, %39 : vector<8x64xf32>
    %41 = arith.truncf %32 : vector<8x64xf32> to vector<8x64xbf16>
    %c0_17 = arith.constant 0 : index
    %c0_18 = arith.constant 0 : index
    %42 = vector.load %arg7[%c0_17, %c0_18] : memref<64x128xbf16, #tpu.memory_space<vmem>>, vector<64x128xbf16>
    %cst_19 = arith.constant dense<0.000000e+00> : vector<8x128xf32>
    %43 = tpu.matmul %41, %42, %cst_19 {dimension_numbers = #tpu.dot_dimension_numbers<[1], [0], [0], [1], [0, 0, 1, 1], [], []>} : vector<8x64xbf16>, vector<64x128xbf16>, vector<8x128xf32> -> vector<8x128xf32>
    %44 = arith.truncf %40 : vector<8x64xf32> to vector<8x64xbf16>
    %c0_20 = arith.constant 0 : index
    %c0_21 = arith.constant 0 : index
    %45 = vector.load %arg8[%c0_20, %c0_21] : memref<64x128xbf16, #tpu.memory_space<vmem>>, vector<64x128xbf16>
    %cst_22 = arith.constant dense<0.000000e+00> : vector<8x128xf32>
    %46 = tpu.matmul %44, %45, %cst_22 {dimension_numbers = #tpu.dot_dimension_numbers<[1], [0], [0], [1], [0, 0, 1, 1], [], []>} : vector<8x64xbf16>, vector<64x128xbf16>, vector<8x128xf32> -> vector<8x128xf32>
    %47 = arith.addf %43, %46 : vector<8x128xf32>
    %c0_23 = arith.constant 0 : index
    %c0_24 = arith.constant 0 : index
    %48 = vector.load %arg9[%c0_23, %c0_24] : memref<1x128xf32, #tpu.memory_space<vmem>>, vector<1x128xf32>
    %49 = vector.broadcast %48 : vector<1x128xf32> to vector<8x128xf32>
    %50 = arith.addf %47, %49 : vector<8x128xf32>
    %cst_25 = arith.constant 0.000000e+00 : f32
    %51 = vector.broadcast %cst_25 : f32 to vector<8x128xf32>
    %52 = arith.maximumf %50, %51 : vector<8x128xf32>
    %53 = arith.truncf %52 : vector<8x128xf32> to vector<8x128xbf16>
    %c0_26 = arith.constant 0 : index
    %c0_27 = arith.constant 0 : index
    %54 = vector.load %arg10[%c0_26, %c0_27] : memref<128x128xbf16, #tpu.memory_space<vmem>>, vector<128x128xbf16>
    %cst_28 = arith.constant dense<0.000000e+00> : vector<8x128xf32>
    %55 = tpu.matmul %53, %54, %cst_28 {dimension_numbers = #tpu.dot_dimension_numbers<[1], [0], [0], [1], [0, 0, 1, 1], [], []>} : vector<8x128xbf16>, vector<128x128xbf16>, vector<8x128xf32> -> vector<8x128xf32>
    %c0_29 = arith.constant 0 : index
    %c0_30 = arith.constant 0 : index
    %56 = vector.load %arg11[%c0_29, %c0_30] : memref<1x128xf32, #tpu.memory_space<vmem>>, vector<1x128xf32>
    %57 = vector.broadcast %56 : vector<1x128xf32> to vector<8x128xf32>
    %58 = arith.addf %55, %57 : vector<8x128xf32>
    %c0_31 = arith.constant 0 : index
    %c0_32 = arith.constant 0 : index
    %59 = vector.load %arg13[%c0_31, %c0_32] : memref<8x128xf32, #tpu.memory_space<vmem>>, vector<8x128xf32>
    tpu.vector_store %arg13[%c0_31, %c0_32], %58 {strides = array<i32>} : memref<8x128xf32, #tpu.memory_space<vmem>>, vector<8x128xf32>,
    %cst_33 = arith.constant dense<0xFF800000> : vector<8xf32>
    %60 = vector.multi_reduction <maximumf>, %58, %cst_33 [1] : vector<8x128xf32> to vector<8xf32>
    %61 = vector.shape_cast %60 : vector<8xf32> to vector<8x1xf32>
    %62 = vector.broadcast %61 : vector<8x1xf32> to vector<8x128xf32>
    %63 = arith.subf %58, %62 : vector<8x128xf32>
    %64 = math.exp %63 : vector<8x128xf32>
    %cst_34 = arith.constant dense<0.000000e+00> : vector<8xf32>
    %65 = vector.multi_reduction <add>, %64, %cst_34 [1] : vector<8x128xf32> to vector<8xf32>
    %66 = vector.shape_cast %65 : vector<8xf32> to vector<8x1xf32>
    %67 = math.log %66 : vector<8x1xf32>
    %68 = arith.addf %67, %61 : vector<8x1xf32>
    %69 = tpu.iota {dimensions = array<i32: 1>} : vector<8x128xi32>
    %c0_35 = arith.constant 0 : index
    %c0_36 = arith.constant 0 : index
    %70 = vector.load %arg12[%c0_35, %c0_36] : memref<8x1xi32, #tpu.memory_space<vmem>>, vector<8x1xi32>
    %71 = vector.broadcast %70 : vector<8x1xi32> to vector<8x128xi32>
    %72 = arith.cmpi eq, %69, %71 : vector<8x128xi32>
    %cst_37 = arith.constant 0.000000e+00 : f32
    %73 = vector.broadcast %cst_37 : f32 to vector<8x128xf32>
    %74 = arith.select %72, %58, %73 : vector<8x128xi1>, vector<8x128xf32>
    %cst_38 = arith.constant dense<0.000000e+00> : vector<8xf32>
    %75 = vector.multi_reduction <add>, %74, %cst_38 [1] : vector<8x128xf32> to vector<8xf32>
    %76 = vector.shape_cast %75 : vector<8xf32> to vector<8x1xf32>
    %c8_i32 = arith.constant 8 : i32
    %77 = arith.muli %arg0, %c8_i32 : i32
    %78 = tpu.iota {dimensions = array<i32: 0>} : vector<8x1xi32>
    %79 = vector.broadcast %77 : i32 to vector<8x1xi32>
    %80 = arith.addi %79, %78 : vector<8x1xi32>
    %c2_i32 = arith.constant 2 : i32
    %81 = vector.broadcast %c2_i32 : i32 to vector<8x1xi32>
    %82 = arith.cmpi slt, %80, %81 : vector<8x1xi32>
    %83 = arith.extui %82 : vector<8x1xi1> to vector<8x1xi32>
    %84 = arith.sitofp %83 : vector<8x1xi32> to vector<8x1xf32>
    %85 = arith.subf %68, %76 : vector<8x1xf32>
    %86 = arith.mulf %84, %85 : vector<8x1xf32>
    %c0_39 = arith.constant 0 : index
    %c0_40 = arith.constant 0 : index
    %87 = vector.load %arg14[%c0_39, %c0_40] : memref<8x1xf32, #tpu.memory_space<vmem>>, vector<8x1xf32>
    tpu.vector_store %arg14[%c0_39, %c0_40], %86 {strides = array<i32>} : memref<8x1xf32, #tpu.memory_space<vmem>>, vector<8x1xf32>,
    return
  }
  func.func @transform_0(%arg0: i32) -> (i32, i32) {
    %c0_i32 = arith.constant 0 : i32
    %c0_i32_0 = arith.constant 0 : i32
    return %arg0, %c0_i32 : i32, i32
  }
  func.func @transform_1(%arg0: i32) -> (i32, i32) {
    %c0_i32 = arith.constant 0 : i32
    %c0_i32_0 = arith.constant 0 : i32
    return %arg0, %c0_i32 : i32, i32
  }
  func.func @transform_2(%arg0: i32) -> (i32, i32) {
    %c0_i32 = arith.constant 0 : i32
    %c0_i32_0 = arith.constant 0 : i32
    %c0_i32_1 = arith.constant 0 : i32
    return %c0_i32, %c0_i32_0 : i32, i32
  }
  func.func @transform_3(%arg0: i32) -> (i32, i32) {
    %c0_i32 = arith.constant 0 : i32
    %c0_i32_0 = arith.constant 0 : i32
    %c0_i32_1 = arith.constant 0 : i32
    return %c0_i32, %c0_i32_0 : i32, i32
  }
  func.func @transform_4(%arg0: i32) -> (i32, i32) {
    %c0_i32 = arith.constant 0 : i32
    %c0_i32_0 = arith.constant 0 : i32
    %c0_i32_1 = arith.constant 0 : i32
    return %c0_i32, %c0_i32_0 : i32, i32
  }
  func.func @transform_5(%arg0: i32) -> (i32, i32) {
    %c0_i32 = arith.constant 0 : i32
    %c0_i32_0 = arith.constant 0 : i32
    %c0_i32_1 = arith.constant 0 : i32
    return %c0_i32, %c0_i32_0 : i32, i32
  }
  func.func @transform_6(%arg0: i32) -> (i32, i32) {
    %c0_i32 = arith.constant 0 : i32
    %c0_i32_0 = arith.constant 0 : i32
    %c0_i32_1 = arith.constant 0 : i32
    return %c0_i32, %c0_i32_0 : i32, i32
  }
  func.func @transform_7(%arg0: i32) -> (i32, i32) {
    %c0_i32 = arith.constant 0 : i32
    %c0_i32_0 = arith.constant 0 : i32
    %c0_i32_1 = arith.constant 0 : i32
    return %c0_i32, %c0_i32_0 : i32, i32
  }
  func.func @transform_8(%arg0: i32) -> (i32, i32) {
    %c0_i32 = arith.constant 0 : i32
    %c0_i32_0 = arith.constant 0 : i32
    %c0_i32_1 = arith.constant 0 : i32
    return %c0_i32, %c0_i32_0 : i32, i32
  }
  func.func @transform_9(%arg0: i32) -> (i32, i32) {
    %c0_i32 = arith.constant 0 : i32
    %c0_i32_0 = arith.constant 0 : i32
    %c0_i32_1 = arith.constant 0 : i32
    return %c0_i32, %c0_i32_0 : i32, i32
  }
  func.func @transform_10(%arg0: i32) -> (i32, i32) {
    %c0_i32 = arith.constant 0 : i32
    %c0_i32_0 = arith.constant 0 : i32
    %c0_i32_1 = arith.constant 0 : i32
    return %c0_i32, %c0_i32_0 : i32, i32
  }
  func.func @transform_11(%arg0: i32) -> (i32, i32) {
    %c0_i32 = arith.constant 0 : i32
    %c0_i32_0 = arith.constant 0 : i32
    return %arg0, %c0_i32 : i32, i32
  }
  func.func @transform_12(%arg0: i32) -> (i32, i32) {
    %c0_i32 = arith.constant 0 : i32
    %c0_i32_0 = arith.constant 0 : i32
    return %arg0, %c0_i32 : i32, i32
  }
  func.func @transform_13(%arg0: i32) -> (i32, i32) {
    %c0_i32 = arith.constant 0 : i32
    %c0_i32_0 = arith.constant 0 : i32
    return %arg0, %c0_i32 : i32, i32
  }
}

module attributes {stable_mosaic.version = 11 : i64} {
  func.func @fusion_ce_kernel(%arg0: i32, %arg1: memref<8x64xf32, #tpu.memory_space<vmem>>, %arg2: memref<8x64xf32, #tpu.memory_space<vmem>>, %arg3: memref<1x64xf32, #tpu.memory_space<vmem>>, %arg4: memref<1x64xf32, #tpu.memory_space<vmem>>, %arg5: memref<1x64xf32, #tpu.memory_space<vmem>>, %arg6: memref<1x64xf32, #tpu.memory_space<vmem>>, %arg7: memref<64x128xbf16, #tpu.memory_space<vmem>>, %arg8: memref<64x128xbf16, #tpu.memory_space<vmem>>, %arg9: memref<1x128xf32, #tpu.memory_space<vmem>>, %arg10: memref<128x128xbf16, #tpu.memory_space<vmem>>, %arg11: memref<1x128xf32, #tpu.memory_space<vmem>>, %arg12: memref<8x1xi32, #tpu.memory_space<vmem>>, %arg13: memref<8x128xf32, #tpu.memory_space<vmem>>, %arg14: memref<8x1xf32, #tpu.memory_space<vmem>>) attributes {dimension_semantics = [#tpu.dimension_semantics<parallel>], iteration_bounds = array<i64: 1>, scalar_prefetch = 0 : i64, scratch_operands = 0 : i64, tpu.core_type = #tpu.core_type<tc>, window_params = [{transform_indices = @transform_0, window_bounds = array<i64: 8, 64>}, {transform_indices = @transform_1, window_bounds = array<i64: 8, 64>}, {pipeline_mode = #tpu.pipeline_mode<synchronous>, transform_indices = @transform_2, window_bounds = array<i64: 1, 64>}, {pipeline_mode = #tpu.pipeline_mode<synchronous>, transform_indices = @transform_3, window_bounds = array<i64: 1, 64>}, {pipeline_mode = #tpu.pipeline_mode<synchronous>, transform_indices = @transform_4, window_bounds = array<i64: 1, 64>}, {pipeline_mode = #tpu.pipeline_mode<synchronous>, transform_indices = @transform_5, window_bounds = array<i64: 1, 64>}, {pipeline_mode = #tpu.pipeline_mode<synchronous>, transform_indices = @transform_6, window_bounds = array<i64: 64, 128>}, {pipeline_mode = #tpu.pipeline_mode<synchronous>, transform_indices = @transform_7, window_bounds = array<i64: 64, 128>}, {pipeline_mode = #tpu.pipeline_mode<synchronous>, transform_indices = @transform_8, window_bounds = array<i64: 1, 128>}, {pipeline_mode = #tpu.pipeline_mode<synchronous>, transform_indices = @transform_9, window_bounds = array<i64: 128, 128>}, {pipeline_mode = #tpu.pipeline_mode<synchronous>, transform_indices = @transform_10, window_bounds = array<i64: 1, 128>}, {transform_indices = @transform_11, window_bounds = array<i64: 8, 1>}, {transform_indices = @transform_12, window_bounds = array<i64: 8, 128>}, {transform_indices = @transform_13, window_bounds = array<i64: 8, 1>}]} {
    %c0 = arith.constant 0 : index
    %c0_0 = arith.constant 0 : index
    %0 = vector.load %arg1[%c0, %c0_0] : memref<8x64xf32, #tpu.memory_space<vmem>>, vector<8x64xf32>
    %c0_1 = arith.constant 0 : index
    %c0_2 = arith.constant 0 : index
    %1 = vector.load %arg2[%c0_1, %c0_2] : memref<8x64xf32, #tpu.memory_space<vmem>>, vector<8x64xf32>
    %cst = arith.constant dense<0.000000e+00> : vector<8xf32>
    %2 = vector.multi_reduction <add>, %0, %cst [1] : vector<8x64xf32> to vector<8xf32>
    %3 = vector.shape_cast %2 : vector<8xf32> to vector<8x1xf32>
    %cst_3 = arith.constant dense<0.000000e+00> : vector<8xf32>
    %4 = vector.multi_reduction <add>, %1, %cst_3 [1] : vector<8x64xf32> to vector<8xf32>
    %5 = vector.shape_cast %4 : vector<8xf32> to vector<8x1xf32>
    %6 = arith.addf %3, %5 : vector<8x1xf32>
    %cst_4 = arith.constant 7.812500e-03 : f32
    %7 = vector.broadcast %cst_4 : f32 to vector<8x1xf32>
    %8 = arith.mulf %6, %7 : vector<8x1xf32>
    %9 = vector.broadcast %8 : vector<8x1xf32> to vector<8x64xf32>
    %10 = arith.subf %0, %9 : vector<8x64xf32>
    %11 = vector.broadcast %8 : vector<8x1xf32> to vector<8x64xf32>
    %12 = arith.subf %1, %11 : vector<8x64xf32>
    %13 = arith.mulf %10, %10 : vector<8x64xf32>
    %cst_5 = arith.constant dense<0.000000e+00> : vector<8xf32>
    %14 = vector.multi_reduction <add>, %13, %cst_5 [1] : vector<8x64xf32> to vector<8xf32>
    %15 = vector.shape_cast %14 : vector<8xf32> to vector<8x1xf32>
    %16 = arith.mulf %12, %12 : vector<8x64xf32>
    %cst_6 = arith.constant dense<0.000000e+00> : vector<8xf32>
    %17 = vector.multi_reduction <add>, %16, %cst_6 [1] : vector<8x64xf32> to vector<8xf32>
    %18 = vector.shape_cast %17 : vector<8xf32> to vector<8x1xf32>
    %19 = arith.addf %15, %18 : vector<8x1xf32>
    %cst_7 = arith.constant 7.812500e-03 : f32
    %20 = vector.broadcast %cst_7 : f32 to vector<8x1xf32>
    %21 = arith.mulf %19, %20 : vector<8x1xf32>
    %cst_8 = arith.constant 9.99999974E-6 : f32
    %22 = vector.broadcast %cst_8 : f32 to vector<8x1xf32>
    %23 = arith.addf %21, %22 : vector<8x1xf32>
    %24 = math.rsqrt %23 : vector<8x1xf32>
    %25 = vector.broadcast %24 : vector<8x1xf32> to vector<8x64xf32>
    %26 = arith.mulf %10, %25 : vector<8x64xf32>
    %c0_9 = arith.constant 0 : index
    %c0_10 = arith.constant 0 : index
    %27 = vector.load %arg3[%c0_9, %c0_10] : memref<1x64xf32, #tpu.memory_space<vmem>>, vector<1x64xf32>
    %28 = vector.broadcast %27 : vector<1x64xf32> to vector<8x64xf32>
    %29 = arith.mulf %26, %28 : vector<8x64xf32>
    %c0_11 = arith.constant 0 : index
    %c0_12 = arith.constant 0 : index
    %30 = vector.load %arg5[%c0_11, %c0_12] : memref<1x64xf32, #tpu.memory_space<vmem>>, vector<1x64xf32>
    %31 = vector.broadcast %30 : vector<1x64xf32> to vector<8x64xf32>
    %32 = arith.addf %29, %31 : vector<8x64xf32>
    %33 = vector.broadcast %24 : vector<8x1xf32> to vector<8x64xf32>
    %34 = arith.mulf %12, %33 : vector<8x64xf32>
    %c0_13 = arith.constant 0 : index
    %c0_14 = arith.constant 0 : index
    %35 = vector.load %arg4[%c0_13, %c0_14] : memref<1x64xf32, #tpu.memory_space<vmem>>, vector<1x64xf32>
    %36 = vector.broadcast %35 : vector<1x64xf32> to vector<8x64xf32>
    %37 = arith.mulf %34, %36 : vector<8x64xf32>
    %c0_15 = arith.constant 0 : index
    %c0_16 = arith.constant 0 : index
    %38 = vector.load %arg6[%c0_15, %c0_16] : memref<1x64xf32, #tpu.memory_space<vmem>>, vector<1x64xf32>
    %39 = vector.broadcast %38 : vector<1x64xf32> to vector<8x64xf32>
    %40 = arith.addf %37, %39 : vector<8x64xf32>
    %41 = arith.truncf %32 : vector<8x64xf32> to vector<8x64xbf16>
    %c0_17 = arith.constant 0 : index
    %c0_18 = arith.constant 0 : index
    %42 = vector.load %arg7[%c0_17, %c0_18] : memref<64x128xbf16, #tpu.memory_space<vmem>>, vector<64x128xbf16>
    %cst_19 = arith.constant dense<0.000000e+00> : vector<8x128xf32>
    %43 = tpu.matmul %41, %42, %cst_19 {dimension_numbers = #tpu.dot_dimension_numbers<[1], [0], [0], [1], [0, 0, 1, 1], [], []>} : vector<8x64xbf16>, vector<64x128xbf16>, vector<8x128xf32> -> vector<8x128xf32>
    %44 = arith.truncf %40 : vector<8x64xf32> to vector<8x64xbf16>
    %c0_20 = arith.constant 0 : index
    %c0_21 = arith.constant 0 : index
    %45 = vector.load %arg8[%c0_20, %c0_21] : memref<64x128xbf16, #tpu.memory_space<vmem>>, vector<64x128xbf16>
    %cst_22 = arith.constant dense<0.000000e+00> : vector<8x128xf32>
    %46 = tpu.matmul %44, %45, %cst_22 {dimension_numbers = #tpu.dot_dimension_numbers<[1], [0], [0], [1], [0, 0, 1, 1], [], []>} : vector<8x64xbf16>, vector<64x128xbf16>, vector<8x128xf32> -> vector<8x128xf32>
    %47 = arith.addf %43, %46 : vector<8x128xf32>
    %c0_23 = arith.constant 0 : index
    %c0_24 = arith.constant 0 : index
    %48 = vector.load %arg9[%c0_23, %c0_24] : memref<1x128xf32, #tpu.memory_space<vmem>>, vector<1x128xf32>
    %49 = vector.broadcast %48 : vector<1x128xf32> to vector<8x128xf32>
    %50 = arith.addf %47, %49 : vector<8x128xf32>
    %cst_25 = arith.constant 0.000000e+00 : f32
    %51 = vector.broadcast %cst_25 : f32 to vector<8x128xf32>
    %52 = arith.maximumf %50, %51 : vector<8x128xf32>
    %53 = arith.truncf %52 : vector<8x128xf32> to vector<8x128xbf16>
    %c0_26 = arith.constant 0 : index
    %c0_27 = arith.constant 0 : index
    %54 = vector.load %arg10[%c0_26, %c0_27] : memref<128x128xbf16, #tpu.memory_space<vmem>>, vector<128x128xbf16>
    %cst_28 = arith.constant dense<0.000000e+00> : vector<8x128xf32>
    %55 = tpu.matmul %53, %54, %cst_28 {dimension_numbers = #tpu.dot_dimension_numbers<[1], [0], [0], [1], [0, 0, 1, 1], [], []>} : vector<8x128xbf16>, vector<128x128xbf16>, vector<8x128xf32> -> vector<8x128xf32>
    %c0_29 = arith.constant 0 : index
    %c0_30 = arith.constant 0 : index
    %56 = vector.load %arg11[%c0_29, %c0_30] : memref<1x128xf32, #tpu.memory_space<vmem>>, vector<1x128xf32>
    %57 = vector.broadcast %56 : vector<1x128xf32> to vector<8x128xf32>
    %58 = arith.addf %55, %57 : vector<8x128xf32>
    %c0_31 = arith.constant 0 : index
    %c0_32 = arith.constant 0 : index
    %59 = vector.load %arg13[%c0_31, %c0_32] : memref<8x128xf32, #tpu.memory_space<vmem>>, vector<8x128xf32>
    tpu.vector_store %arg13[%c0_31, %c0_32], %58 {strides = array<i32>} : memref<8x128xf32, #tpu.memory_space<vmem>>, vector<8x128xf32>,
    %cst_33 = arith.constant dense<0xFF800000> : vector<8xf32>
    %60 = vector.multi_reduction <maximumf>, %58, %cst_33 [1] : vector<8x128xf32> to vector<8xf32>
    %61 = vector.shape_cast %60 : vector<8xf32> to vector<8x1xf32>
    %62 = vector.broadcast %61 : vector<8x1xf32> to vector<8x128xf32>
    %63 = arith.subf %58, %62 : vector<8x128xf32>
    %64 = math.exp %63 : vector<8x128xf32>
    %cst_34 = arith.constant dense<0.000000e+00> : vector<8xf32>
    %65 = vector.multi_reduction <add>, %64, %cst_34 [1] : vector<8x128xf32> to vector<8xf32>
    %66 = vector.shape_cast %65 : vector<8xf32> to vector<8x1xf32>
    %67 = math.log %66 : vector<8x1xf32>
    %68 = arith.addf %67, %61 : vector<8x1xf32>
    %69 = tpu.iota {dimensions = array<i32: 1>} : vector<8x128xi32>
    %c0_35 = arith.constant 0 : index
    %c0_36 = arith.constant 0 : index
    %70 = vector.load %arg12[%c0_35, %c0_36] : memref<8x1xi32, #tpu.memory_space<vmem>>, vector<8x1xi32>
    %71 = vector.broadcast %70 : vector<8x1xi32> to vector<8x128xi32>
    %72 = arith.cmpi eq, %69, %71 : vector<8x128xi32>
    %cst_37 = arith.constant 0.000000e+00 : f32
    %73 = vector.broadcast %cst_37 : f32 to vector<8x128xf32>
    %74 = arith.select %72, %58, %73 : vector<8x128xi1>, vector<8x128xf32>
    %cst_38 = arith.constant dense<0.000000e+00> : vector<8xf32>
    %75 = vector.multi_reduction <add>, %74, %cst_38 [1] : vector<8x128xf32> to vector<8xf32>
    %76 = vector.shape_cast %75 : vector<8xf32> to vector<8x1xf32>
    %c8_i32 = arith.constant 8 : i32
    %77 = arith.muli %arg0, %c8_i32 : i32
    %78 = tpu.iota {dimensions = array<i32: 0>} : vector<8x1xi32>
    %79 = vector.broadcast %77 : i32 to vector<8x1xi32>
    %80 = arith.addi %79, %78 : vector<8x1xi32>
    %c2_i32 = arith.constant 2 : i32
    %81 = vector.broadcast %c2_i32 : i32 to vector<8x1xi32>
    %82 = arith.cmpi slt, %80, %81 : vector<8x1xi32>
    %83 = arith.extui %82 : vector<8x1xi1> to vector<8x1xi32>
    %84 = arith.sitofp %83 : vector<8x1xi32> to vector<8x1xf32>
    %85 = arith.subf %68, %76 : vector<8x1xf32>
    %86 = arith.mulf %84, %85 : vector<8x1xf32>
    %c0_39 = arith.constant 0 : index
    %c0_40 = arith.constant 0 : index
    %87 = vector.load %arg14[%c0_39, %c0_40] : memref<8x1xf32, #tpu.memory_space<vmem>>, vector<8x1xf32>
    tpu.vector_store %arg14[%c0_39, %c0_40], %86 {strides = array<i32>} : memref<8x1xf32, #tpu.memory_space<vmem>>, vector<8x1xf32>,
    return
  }
  func.func @transform_0(%arg0: i32) -> (i32, i32) {
    %c0_i32 = arith.constant 0 : i32
    %c0_i32_0 = arith.constant 0 : i32
    return %arg0, %c0_i32 : i32, i32
  }
  func.func @transform_1(%arg0: i32) -> (i32, i32) {
    %c0_i32 = arith.constant 0 : i32
    %c0_i32_0 = arith.constant 0 : i32
    return %arg0, %c0_i32 : i32, i32
  }
  func.func @transform_2(%arg0: i32) -> (i32, i32) {
    %c0_i32 = arith.constant 0 : i32
    %c0_i32_0 = arith.constant 0 : i32
    %c0_i32_1 = arith.constant 0 : i32
    return %c0_i32, %c0_i32_0 : i32, i32
  }
  func.func @transform_3(%arg0: i32) -> (i32, i32) {
    %c0_i32 = arith.constant 0 : i32
    %c0_i32_0 = arith.constant 0 : i32
    %c0_i32_1 = arith.constant 0 : i32
    return %c0_i32, %c0_i32_0 : i32, i32
  }
  func.func @transform_4(%arg0: i32) -> (i32, i32) {
    %c0_i32 = arith.constant 0 : i32
    %c0_i32_0 = arith.constant 0 : i32
    %c0_i32_1 = arith.constant 0 : i32
    return %c0_i32, %c0_i32_0 : i32, i32
  }
  func.func @transform_5(%arg0: i32) -> (i32, i32) {
    %c0_i32 = arith.constant 0 : i32
    %c0_i32_0 = arith.constant 0 : i32
    %c0_i32_1 = arith.constant 0 : i32
    return %c0_i32, %c0_i32_0 : i32, i32
  }
  func.func @transform_6(%arg0: i32) -> (i32, i32) {
    %c0_i32 = arith.constant 0 : i32
    %c0_i32_0 = arith.constant 0 : i32
    %c0_i32_1 = arith.constant 0 : i32
    return %c0_i32, %c0_i32_0 : i32, i32
  }
  func.func @transform_7(%arg0: i32) -> (i32, i32) {
    %c0_i32 = arith.constant 0 : i32
    %c0_i32_0 = arith.constant 0 : i32
    %c0_i32_1 = arith.constant 0 : i32
    return %c0_i32, %c0_i32_0 : i32, i32
  }
  func.func @transform_8(%arg0: i32) -> (i32, i32) {
    %c0_i32 = arith.constant 0 : i32
    %c0_i32_0 = arith.constant 0 : i32
    %c0_i32_1 = arith.constant 0 : i32
    return %c0_i32, %c0_i32_0 : i32, i32
  }
  func.func @transform_9(%arg0: i32) -> (i32, i32) {
    %c0_i32 = arith.constant 0 : i32
    %c0_i32_0 = arith.constant 0 : i32
    %c0_i32_1 = arith.constant 0 : i32
    return %c0_i32, %c0_i32_0 : i32, i32
  }
  func.func @transform_10(%arg0: i32) -> (i32, i32) {
    %c0_i32 = arith.constant 0 : i32
    %c0_i32_0 = arith.constant 0 : i32
    %c0_i32_1 = arith.constant 0 : i32
    return %c0_i32, %c0_i32_0 : i32, i32
  }
  func.func @transform_11(%arg0: i32) -> (i32, i32) {
    %c0_i32 = arith.constant 0 : i32
    %c0_i32_0 = arith.constant 0 : i32
    return %arg0, %c0_i32 : i32, i32
  }
  func.func @transform_12(%arg0: i32) -> (i32, i32) {
    %c0_i32 = arith.constant 0 : i32
    %c0_i32_0 = arith.constant 0 : i32
    return %arg0, %c0_i32 : i32, i32
  }
  func.func @transform_13(%arg0: i32) -> (i32, i32) {
    %c0_i32 = arith.constant 0 : i32
    %c0_i32_0 = arith.constant 0 : i32
    return %arg0, %c0_i32 : i32, i32
  }
}

</mosaic_0001>

<bundles_post_ra>
// kernel: tpu_custom_call.1
= control target key start
LH: loop header
LB: loop body
LE: loop exit
PB: predicated region body
PF: predicated region fallthrough
CT: control target
= control target key end

     0   :  { %19 = vsyncpa [#allocation3], 0  ;;  %s984_s0 = inlined_call_operand.hbm [shape: f32[8,64], index: 0, kind: input, shape index: {}]   ;;  %s985_s1 = inlined_call_operand.hbm [shape: f32[8,64], index: 1, kind: input, shape index: {}]   ;;  %s986_s2 = inlined_call_operand.vmem [shape: f32[1,64], index: 2, kind: input, shape index: {}]   ;;  %s987_s3 = inlined_call_operand.vmem [shape: f32[1,64], index: 3, kind: input, shape index: {}]   ;;  %s988_s4 = inlined_call_operand.vmem [shape: f32[1,64], index: 4, kind: input, shape index: {}]   ;;  %s989_s5 = inlined_call_operand.hbm [shape: f32[1,64], index: 5, kind: input, shape index: {}]   ;;  %s990_s6 = inlined_call_operand.hbm [shape: bf16[64,128], index: 6, kind: input, shape index: {}]   ;;  %s991_s7 = inlined_call_operand.vmem [shape: bf16[64,128], index: 7, kind: input, shape index: {}]   ;;  %s992_s8 = inlined_call_operand.vmem [shape: f32[1,128], index: 8, kind: input, shape index: {}]   ;;  %s993_s9 = inlined_call_operand.hbm [shape: bf16[128,128], index: 9, kind: input, shape index: {}]   ;;  %s994_s10 = inlined_call_operand.vmem [shape: f32[1,128], index: 10, kind: input, shape index: {}]   ;;  %s995_s11 = inlined_call_operand.vmem [shape: s32[8,1], index: 11, kind: input, shape index: {}]   ;;  %s996_s12 = inlined_call_operand.hbm [shape: f32[8,128], index: 12, kind: output, shape index: {0}]   ;;  %s997_s13 = inlined_call_operand.vmem [shape: f32[8,1], index: 13, kind: output, shape index: {1}]  }
   0x1   :  { %20 = vsyncpa [#allocation6], 0 }
   0x2   :  { %21 = vsyncpa [#allocation9], 0 }
   0x3   :  { %22 = vsyncpa [#allocation4], 0  ;;  %s756_s25 = smov [#allocation5]   ;;  %s757_s27 = smov [#allocation8]  }
   0x4   :  { %s39_s26 = sshll.u32 %s756_s25, 4  ;;  %s64_s28 = sshll.u32 %s757_s27, 4  ;;  %s40_s26 = int_to_ptr.vmem [resolvable:$true] %s39_s26  ;;  %s837_s28 = int_to_ptr.vmem [resolvable:$true] %s64_s28 }
   0x5   :  { %s616_s14 = scalar_lea.hbm %s985_s1, 128 }
   0x6   :  { %p617_p0 = scmp.ne.s32.totalorder %s985_s1, %s616_s14  ;;  %p620_p1 = scmp.lt.u32.totalorder %s616_s14, %s985_s1 }
   0x8   :  { %p622_p2 = pnand %p620_p1, %p617_p0 }
   0xa   :  { %625 = shalt.err (!%p622_p2)
}
   0xb   :  { %s626_s19 = scalar_lea.vmem %s40_s26, 128  ;;  %p631_p4 = scmp.lt.s32.totalorder %s40_s26, %s40_s26 }
   0xc   :  { %p627_p3 = scmp.ne.s32.totalorder %s40_s26, %s626_s19  ;;  %p632_p5 = scmp.lt.s32.totalorder %s626_s19, %s626_s19 }
   0xe   :  { %p633_p6 = por %p632_p5, %p631_p4 }
  0x10   :  { %p634_p7 = pnand %p633_p6, %p627_p3 }
  0x12   :  { %637 = shalt.err (!%p634_p7)
}
  0x13   :  { %42 = dma.hbm_to_vmem [thread:$0]  %s985_s1, 128, %s40_s26, [#allocation6]  }
  0x14   :  { %s638_s24 = scalar_lea.hbm %s990_s6, 512 }
  0x15   :  { %p639_p8 = scmp.ne.s32.totalorder %s990_s6, %s638_s24  ;;  %p642_p9 = scmp.lt.u32.totalorder %s638_s24, %s990_s6 }
  0x17   :  { %p644_p10 = pnand %p642_p9, %p639_p8 }
  0x19   :  { %647 = shalt.err (!%p644_p10)
}
  0x1a   :  { %s648_s14 = scalar_lea.vmem %s837_s28, 512  ;;  %p653_p12 = scmp.lt.s32.totalorder %s837_s28, %s837_s28 }
  0x1b   :  { %p649_p11 = scmp.ne.s32.totalorder %s837_s28, %s648_s14  ;;  %p654_p13 = scmp.lt.s32.totalorder %s648_s14, %s648_s14 }
  0x1d   :  { %p655_p0 = por %p654_p13, %p653_p12 }
  0x1f   :  { %p656_p1 = pnand %p655_p0, %p649_p11 }
  0x21   :  { %659 = shalt.err (!%p656_p1)
}
  0x22   :  { %s758_s1 = smov 64   ;;  %s759_s26 = smov 4  }
  0x23   :  { %70 = dma.hbm_to_vmem [thread:$0]  %s990_s6, 512, %s837_s28, [#allocation9], %s758_s1, %s758_s1, %s759_s26  }
  0x24   :  { %s760_s17 = smov [#allocation2]   ;;  %s761_s19 = smov [#allocation7]  }
  0x25   :  { %s29_s18 = sshll.u32 %s760_s17, 4  ;;  %s55_s20 = sshll.u32 %s761_s19, 4  ;;  %s30_s18 = int_to_ptr.vmem [resolvable:$true] %s29_s18  ;;  %s56_s20 = int_to_ptr.vmem [resolvable:$true] %s55_s20 }
  0x26   :  { %s660_s23 = scalar_lea.hbm %s984_s0, 128 }
  0x27   :  { %p661_p2 = scmp.ne.s32.totalorder %s984_s0, %s660_s23  ;;  %p664_p3 = scmp.lt.u32.totalorder %s660_s23, %s984_s0 }
  0x29   :  { %p666_p4 = pnand %p664_p3, %p661_p2 }
  0x2b   :  { %669 = shalt.err (!%p666_p4)
}
  0x2c   :  { %s670_s6 = scalar_lea.vmem %s30_s18, 128  ;;  %p675_p6 = scmp.lt.s32.totalorder %s30_s18, %s30_s18 }
  0x2d   :  { %p671_p5 = scmp.ne.s32.totalorder %s30_s18, %s670_s6  ;;  %p676_p7 = scmp.lt.s32.totalorder %s670_s6, %s670_s6 }
  0x2f   :  { %p677_p8 = por %p676_p7, %p675_p6 }
  0x31   :  { %p678_p9 = pnand %p677_p8, %p671_p5 }
  0x33   :  { %681 = shalt.err (!%p678_p9)
}
  0x34   :  { %32 = dma.hbm_to_vmem [thread:$0]  %s984_s0, 128, %s30_s18, [#allocation3]  }
  0x35   :  { %s682_s16 = scalar_lea.hbm %s989_s5, 16 }
  0x36   :  { %p683_p10 = scmp.ne.s32.totalorder %s989_s5, %s682_s16  ;;  %p686_p11 = scmp.lt.u32.totalorder %s682_s16, %s989_s5 }
  0x38   :  { %p688_p12 = pnand %p686_p11, %p683_p10 }
  0x3a   :  { %691 = shalt.err (!%p688_p12)
}
  0x3b   :  { %s692_s23 = scalar_lea.vmem %s56_s20, 16  ;;  %s696_s24 = scalar_lea.vmem %s56_s20, 32 }
  0x3c   :  { %p693_p13 = scmp.ne.s32.totalorder %s56_s20, %s692_s23  ;;  %p697_p0 = scmp.lt.s32.totalorder %s56_s20, %s56_s20 }
  0x3d   :  { %p698_p1 = scmp.lt.s32.totalorder %s696_s24, %s692_s23 }
  0x3f   :  { %p699_p2 = por %p698_p1, %p697_p0 }
  0x41   :  { %p700_p3 = pnand %p699_p2, %p693_p13 }
  0x43   :  { %703 = shalt.err (!%p700_p3)
}
  0x44   :  { %58 = dma.hbm_to_vmem [thread:$0]  %s989_s5, 16, %s56_s20, [#allocation6]  }
  0x45   :  { %s762_s25 = smov [#allocation10]   ;;  %s704_s28 = scalar_lea.hbm %s993_s9, 1024 }
  0x46   :  { %s80_s27 = sshll.u32 %s762_s25, 4  ;;  %p705_p4 = scmp.ne.s32.totalorder %s993_s9, %s704_s28  ;;  %s81_s27 = int_to_ptr.vmem [resolvable:$true] %s80_s27 }
  0x47   :  { %p708_p5 = scmp.lt.u32.totalorder %s704_s28, %s993_s9 }
  0x49   :  { %p710_p6 = pnand %p708_p5, %p705_p4 }
  0x4b   :  { %713 = shalt.err (!%p710_p6)
}
  0x4c   :  { %s714_s17 = scalar_lea.vmem %s81_s27, 1024  ;;  %p719_p8 = scmp.lt.s32.totalorder %s81_s27, %s81_s27 }
  0x4d   :  { %p715_p7 = scmp.ne.s32.totalorder %s81_s27, %s714_s17  ;;  %p720_p9 = scmp.lt.s32.totalorder %s714_s17, %s714_s17 }
  0x4f   :  { %p721_p10 = por %p720_p9, %p719_p8 }
  0x51   :  { %p722_p11 = pnand %p721_p10, %p715_p7 }
  0x53   :  { %725 = shalt.err (!%p722_p11)
}
  0x54   :  { %86 = dma.hbm_to_vmem [thread:$0]  %s993_s9, 1024, %s81_s27, [#allocation9], %s758_s1, %s758_s1, %s759_s26  }
  0x55   :  { %748 = dma.done.wait [#allocation3], 128  }
  0x56   :  { %749 = vsyncadd [#allocation3], 4294967168 }
  0x57   :  { %750 = dma.done.wait [#allocation6], 144  }
  0x58   :  { %751 = vsyncadd [#allocation6], 4294967152 }
  0x59   :  { %752 = dma.done.wait [#allocation9], 1536  }
  0x5a   :  { %753 = vsyncadd [#allocation9], 4294965760  ;;  %vm109_vm0 = vcmask 523264   ;;  %v107_v0 = vld [vmem:[#allocation2] sm:$0xff]  ;;  %v108_v1 = vld [vmem:[#allocation5] sm:$0xff]  ;;  %v763_v15 = vmov 0.0  }
  0x5b   :  { %v110_v2 = vsel %vm109_vm0, %v107_v0, 0.0  ;;  %v113_v3 = vsel %vm109_vm0, %v108_v1, 0.0  ;;  %v594_v14 = vld [vmem:[%s991_s7] sm:$0xff]   ;;  %537 = vmatprep.subr.bf16.mxu1 %v763_v15  ;;  %561 = vmatprep.subr.bf16.mxu0 %v763_v15  ;;  %v595_v16 = vld [vmem:[%s991_s7 + $0x8] sm:$0xff]   ;;  %v596_v17 = vld [vmem:[%s991_s7 + $0x10] sm:$0xff]   ;;  %vm764_vm1 = vmmov 0  }
  0x5c   :  { %111 = vadd.xlane.f32.xlu0 %v110_v2  ;;  %538 = vmatpush3.bf16.msra.mxu1 %v594_v14  ;;  %v597_v18 = vld [vmem:[%s991_s7 + $0x18] sm:$0xff]   ;;  %v495_v27 = vld [vmem:[%s987_s3] ss:$0 sm:$0xff]  ;;  %v496_v29 = vld [vmem:[#allocation7] ss:$0 sm:$0xff]  ;;  %v765_v50 = vmov 0  }
  0x5d   :  { %539 = vmatprep.subr.bf16.mxu1 %v763_v15  ;;  %545 = vmatprep.mubr.msk.bf16.mxu1 %vm764_vm1, %v763_v15  ;;  %v602_v19 = vld [vmem:[#allocation10] sm:$0xff]   ;;  %v603_v20 = vld [vmem:[#allocation10 + $0x8] sm:$0xff]   ;;  %v600_v37 = vld [vmem:[#allocation8 + $0x10] sm:$0xff]  }
  0x5e   :  { %577 = vmatprep.mubr.msk.bf16.mxu0 %vm764_vm1, %v763_v15  ;;  %562 = vmatpush3.bf16.msra.mxu0 %v602_v19  ;;  %v598_v32 = vld [vmem:[#allocation8] sm:$0xff]   ;;  %v599_v34 = vld [vmem:[#allocation8 + $0x8] sm:$0xff]   ;;  %v601_v40 = vld [vmem:[#allocation8 + $0x18] sm:$0xff]  }
  0x5f   :  { %563 = vmatprep.subr.bf16.mxu0 %v763_v15  ;;  %v493_v36 = vld [vmem:[%s986_s2] ss:$0 sm:$0xff]  ;;  %v604_v43 = vld [vmem:[#allocation10 + $0x10] sm:$0xff]   ;;  %v605_v44 = vld [vmem:[#allocation10 + $0x18] sm:$0xff]   ;;  %592 = vset.pattern.permute.xlu1 %v765_v50 }
  0x60   :  { %114 = vadd.xlane.f32.xlu0 %v113_v3  ;;  %540 = vmatpush3.bf16.msra.mxu1 %v595_v16  ;;  %v494_v39 = vld [vmem:[%s988_s4] ss:$0 sm:$0xff]  ;;  %v606_v45 = vld [vmem:[#allocation10 + $0x20] sm:$0xff]   ;;  %v608_v47 = vld [vmem:[#allocation10 + $0x30] sm:$0xff]  }
  0x61   :  { %541 = vmatprep.subr.bf16.mxu1 %v763_v15  ;;  %v607_v46 = vld [vmem:[#allocation10 + $0x28] sm:$0xff]   ;;  %v609_v48 = vld [vmem:[#allocation10 + $0x38] sm:$0xff]   ;;  %593 = vset.pattern.permute.xlu0 %v765_v50 }
  0x62   :  { %564 = vmatpush3.bf16.msra.mxu0 %v603_v20  ;;  %v452_v49 = vld [vmem:[%s995_s11] sm:$0xff] }
  0x63   :  { %565 = vmatprep.subr.bf16.mxu0 %v763_v15  ;;  %v507_v56 = vld [vmem:[%s992_s8] ss:$0 sm:$0xff]  ;;  %s766_s8 = smov [#allocation11]  }
  0x64   :  { %542 = vmatpush3.bf16.msra.mxu1 %v596_v17 }
  0x65   :  { %543 = vmatprep.subr.bf16.mxu1 %v763_v15 }
  0x66   :  { %566 = vmatpush3.bf16.msra.mxu0 %v604_v43 }
  0x67   :  { %567 = vmatprep.subr.bf16.mxu0 %v763_v15 }
  0x68   :  { %544 = vmatpush3.bf16.msra.mxu1 %v597_v18 }
  0x69   :  { %549 = vmatprep.subr.bf16.mxu1 %v763_v15 }
  0x6a   :  { %568 = vmatpush3.bf16.msra.mxu0 %v605_v44 }
  0x6b   :  { %569 = vmatprep.subr.bf16.mxu0 %v763_v15 }
  0x6e   :  { %570 = vmatpush3.bf16.msra.mxu0 %v606_v45 }
  0x6f   :  { %571 = vmatprep.subr.bf16.mxu0 %v763_v15 }
  0x72   :  { %572 = vmatpush3.bf16.msra.mxu0 %v607_v46 }
  0x73   :  { %573 = vmatprep.subr.bf16.mxu0 %v763_v15 }
  0x76   :  { %574 = vmatpush3.bf16.msra.mxu0 %v608_v47 }
  0x77   :  { %575 = vmatprep.subr.bf16.mxu0 %v763_v15 }
  0x7a   :  { %576 = vmatpush3.bf16.msra.mxu0 %v609_v48 }
  0xe9   :  { %v112_v4 = vpop.xlane.xlu0 %111 }
  0xed   :  { %v115_v5 = vpop.xlane.xlu0 %114 }
  0xee   :  { %v116_v6 = vadd.f32 %v115_v5, %v112_v4 }
  0xf0   :  { %v117_v7 = vmul.f32 0.0078125, %v116_v6 }
  0xf2   :  { %v118_v8 = vsub.f32 %v107_v0, %v117_v7  ;;  %v119_v9 = vsub.f32 %v108_v1, %v117_v7  ;;  %v508_v0 = vld [vmem:[%s994_s10] ss:$0 sm:$0xff]  ;;  %s478_s10 = sshll.u32 %s766_s8, 4  ;;  %s479_s10 = int_to_ptr.vmem [resolvable:$true] %s478_s10 }
  0xf3   :  { %s726_s30 = scalar_lea.vmem %s479_s10, 128  ;;  %p731_p13 = scmp.lt.s32.totalorder %s479_s10, %s479_s10 }
  0xf4   :  { %v120_v10 = vmul.f32 %v118_v8, %v118_v8  ;;  %v124_v12 = vmul.f32 %v119_v9, %v119_v9  ;;  %p727_p12 = scmp.ne.s32.totalorder %s479_s10, %s726_s30  ;;  %p732_p0 = scmp.lt.s32.totalorder %s726_s30, %s726_s30 }
  0xf6   :  { %v121_v11 = vsel %vm109_vm0, %v120_v10, 0.0  ;;  %v125_v13 = vsel %vm109_vm0, %v124_v12, 0.0  ;;  %p733_p1 = por %p732_p0, %p731_p13 }
  0xf7   :  { %122 = vadd.xlane.f32.xlu1 %v121_v11 }
  0xf8   :  { %p734_p2 = pnand %p733_p1, %p727_p12 }
  0xfb   :  { %126 = vadd.xlane.f32.xlu1 %v125_v13 }
 0x10c   :  { %454 = vperm.xlu1 %592, %v452_v49  }
 0x184   :  { %v123_v21 = vpop.xlane.xlu1 %122 }
 0x188   :  { %v127_v22 = vpop.xlane.xlu1 %126 }
 0x189   :  { %v128_v23 = vadd.f32 %v127_v22, %v123_v21 }
 0x18b   :  { %v129_v24 = vmul.f32 0.0078125, %v128_v23 }
 0x18c   :  { %v455_v11 = vpop.permute.xlu1 %454 }
 0x18d   :  { %v130_v25 = vadd.f32 1e-05, %v129_v24 }
 0x18f   :  { %610 = vrsqrt.f32 %v130_v25 }
 0x199   :  { %v611_v26 = vpop.eup %610 }
 0x19a   :  { %v149_v28 = vmul.f32 %v611_v26, %v119_v9  ;;  %v132_v35 = vmul.f32 %v611_v26, %v118_v8  ;;  %v450_v9 = vlaneseq }
 0x19c   :  { %v157_v30 = vmul.f32 %v495_v27, %v149_v28  ;;  %v140_v38 = vmul.f32 %v493_v36, %v132_v35  ;;  %v451_v10 = vand.u32 127, %v450_v9 }
 0x19e   :  { %v165_v31 = vadd.f32 %v496_v29, %v157_v30  ;;  %v148_v41 = vadd.f32 %v494_v39, %v140_v38  ;;  %vm456_vm2 = vcmp.eq.s32.totalorder %v451_v10, %v455_v11 }
 0x1a0   :  { %v175_v33 = vpack.c.bf16 %v165_v31, %v165_v31  ;;  %v166_v42 = vpack.c.bf16 %v148_v41, %v148_v41 }
 0x1a2   :  { %546 = vmatmul.mubr.msk.bf16.vlgmr.msra.gmra.mrb[0].mxu1 %vm109_vm0, %v175_v33 }
 0x1a3   :  { %550 = vmatpush3.bf16.msra.mxu1 %v598_v32  ;;  %557 = vmatprep.mubr.msk.bf16.mxu1 %vm764_vm1, %v763_v15 }
 0x1a4   :  { %551 = vmatprep.subr.bf16.mxu1 %v763_v15 }
 0x1a7   :  { %552 = vmatpush3.bf16.msra.mxu1 %v599_v34 }
 0x1a8   :  { %553 = vmatprep.subr.bf16.mxu1 %v763_v15 }
 0x1ab   :  { %554 = vmatpush3.bf16.msra.mxu1 %v600_v37 }
 0x1ac   :  { %555 = vmatprep.subr.bf16.mxu1 %v763_v15 }
 0x1af   :  { %556 = vmatpush3.bf16.msra.mxu1 %v601_v40 }
 0x1b2   :  { %558 = vmatmul.mubr.msk.bf16.vlgmr.msra.gmra.mrb[4].mxu1 %vm109_vm0, %v166_v42 }
 0x275   :  { %v245_v51 = vpop.f32.mrb[0].mxu1 }
 0x276   :  { %v547_v52 = vpop.f32.mrb[1].mxu1 }
 0x277   :  { %v248_v53 = vpop.f32.mrb[2].mxu1 }
 0x278   :  { %v548_v54 = vpop.f32.mrb[3].mxu1 }
 0x285   :  { %v312_v55 = vpop.f32.mrb[4].mxu1 }
 0x286   :  { %v313_v57 = vadd.f32 %v312_v55, %v245_v51  ;;  %v559_v58 = vpop.f32.mrb[5].mxu1 }
 0x287   :  { %v315_v59 = vpop.f32.mrb[6].mxu1 }
 0x288   :  { %v325_v60 = vadd.f32 %v507_v56, %v313_v57  ;;  %v560_v61 = vpop.f32.mrb[7].mxu1 }
 0x28a   :  { %v326_v62 = vmax.f32 %v325_v60, 0.0 }
 0x28c   :  { %v327_v63 = vpack.c.bf16 %v326_v62, %v326_v62 }
 0x28e   :  { %578 = vmatmul.mubr.bf16.vlgmr.msra.gmra.mrb[0].mxu0 %v327_v63 }
 0x361   :  { %v433_v1 = vpop.f32.mrb[0].mxu0 }
 0x362   :  { %v434_v2 = vadd.f32 %v508_v0, %v433_v1  ;;  %v579_v3 = vpop.f32.mrb[1].mxu0 }
 0x363   :  { %v436_v4 = vpop.f32.mrb[2].mxu0 }
 0x364   :  { %439 = vst [vmem:[#allocation11] sm:$0xff] %v434_v2  ;;  %440 = vmax.xlane.f32.xlu0 %v434_v2  ;;  %v580_v5 = vpop.f32.mrb[3].mxu0  ;;  %v457_v13 = vsel %vm456_vm2, %v434_v2, 0.0 }
 0x3f1   :  { %v441_v6 = vpop.xlane.xlu0 %440 }
 0x3f2   :  { %v442_v7 = vsub.f32 %v434_v2, %v441_v6 }
 0x3f4   :  { %v443_v8 = vmul.f32 1.442695, %v442_v7 }
 0x3f6   :  { %612 = vpow2.f32 %v443_v8 }
 0x400   :  { %v613_v12 = vpop.eup %612 }
 0x401   :  { %445 = vadd.xlane.f32.xlu0 %v613_v12 }
 0x405   :  { %458 = vadd.xlane.f32.xlu0 %v457_v13 }
 0x406   :  { %737 = shalt.err (!%p734_p2)
}
 0x407   :  { %s738_s16 = scalar_lea.hbm %s996_s12, 128 }
 0x408   :  { %p739_p3 = scmp.ne.s32.totalorder %s996_s12, %s738_s16  ;;  %p742_p4 = scmp.lt.u32.totalorder %s738_s16, %s996_s12 }
 0x40a   :  { %p744_p5 = pnand %p742_p4, %p739_p3 }
 0x40c   :  { %747 = shalt.err (!%p744_p5)
}
 0x40d   :  { %481 = dma.vmem_to_hbm [thread:$0]  %s479_s10, 128, %s996_s12, [#allocation4]   ;;  %v462_v16 = vshrl.u32 %v450_v9, 7  ;;  %vm470_vm4 = vcmask 7168  }
 0x40f   :  { %vm465_vm3 = vcmp.lt.s32.totalorder %v462_v16, 2 }
 0x410   :  { %v517_v20 = vsel %vm465_vm3, 1.0, %v763_v15 }
 0x48e   :  { %v446_v14 = vpop.xlane.xlu0 %445 }
 0x48f   :  { %614 = vlog2.f32 %v446_v14 }
 0x492   :  { %v459_v21 = vpop.xlane.xlu0 %458 }
 0x499   :  { %v615_v17 = vpop.eup %614 }
 0x49a   :  { %v448_v18 = vmul.f32 0.6931472, %v615_v17 }
 0x49c   :  { %v449_v19 = vadd.f32 %v448_v18, %v441_v6 }
 0x49e   :  { %v468_v22 = vsub.f32 %v449_v19, %v459_v21 }
 0x4a0   :  { %v469_v23 = vmul.f32 %v517_v20, %v468_v22 }
 0x4a2   :  { %471 = vst.msk [vmem:[%s997_s13] sm:$0xff] %vm470_vm4, %v469_v23 }
 0x4a3   :  { %754 = dma.done.wait [#allocation4], 128  }
 0x4a4   :  { %755 = vsyncadd [#allocation4], 4294967168 }
 0x4a5   :  { %489 = vsyncpa [#allocation3], 1 }
 0x4a6   :  { %490 = vsyncpa [#allocation6], 1 }
 0x4a7   :  { %491 = vsyncpa [#allocation9], 1 }
 0x4a8   :  { %492 = vsyncpa [#allocation4], 1 }

// kernel: tpu_custom_call.1
= control target key start
LH: loop header
LB: loop body
LE: loop exit
PB: predicated region body
PF: predicated region fallthrough
CT: control target
= control target key end

     0   :  { %19 = vsyncpa [#allocation3], 0  ;;  %s984_s0 = inlined_call_operand.hbm [shape: f32[8,64], index: 0, kind: input, shape index: {}]   ;;  %s985_s1 = inlined_call_operand.hbm [shape: f32[8,64], index: 1, kind: input, shape index: {}]   ;;  %s986_s2 = inlined_call_operand.vmem [shape: f32[1,64], index: 2, kind: input, shape index: {}]   ;;  %s987_s3 = inlined_call_operand.vmem [shape: f32[1,64], index: 3, kind: input, shape index: {}]   ;;  %s988_s4 = inlined_call_operand.vmem [shape: f32[1,64], index: 4, kind: input, shape index: {}]   ;;  %s989_s5 = inlined_call_operand.hbm [shape: f32[1,64], index: 5, kind: input, shape index: {}]   ;;  %s990_s6 = inlined_call_operand.hbm [shape: bf16[64,128], index: 6, kind: input, shape index: {}]   ;;  %s991_s7 = inlined_call_operand.vmem [shape: bf16[64,128], index: 7, kind: input, shape index: {}]   ;;  %s992_s8 = inlined_call_operand.vmem [shape: f32[1,128], index: 8, kind: input, shape index: {}]   ;;  %s993_s9 = inlined_call_operand.hbm [shape: bf16[128,128], index: 9, kind: input, shape index: {}]   ;;  %s994_s10 = inlined_call_operand.vmem [shape: f32[1,128], index: 10, kind: input, shape index: {}]   ;;  %s995_s11 = inlined_call_operand.vmem [shape: s32[8,1], index: 11, kind: input, shape index: {}]   ;;  %s996_s12 = inlined_call_operand.hbm [shape: f32[8,128], index: 12, kind: output, shape index: {0}]   ;;  %s997_s13 = inlined_call_operand.vmem [shape: f32[8,1], index: 13, kind: output, shape index: {1}]  }
   0x1   :  { %20 = vsyncpa [#allocation6], 0 }
   0x2   :  { %21 = vsyncpa [#allocation9], 0 }
   0x3   :  { %22 = vsyncpa [#allocation4], 0  ;;  %s756_s25 = smov [#allocation5]   ;;  %s757_s27 = smov [#allocation8]  }
   0x4   :  { %s39_s26 = sshll.u32 %s756_s25, 4  ;;  %s64_s28 = sshll.u32 %s757_s27, 4  ;;  %s40_s26 = int_to_ptr.vmem [resolvable:$true] %s39_s26  ;;  %s837_s28 = int_to_ptr.vmem [resolvable:$true] %s64_s28 }
   0x5   :  { %s616_s14 = scalar_lea.hbm %s985_s1, 128 }
   0x6   :  { %p617_p0 = scmp.ne.s32.totalorder %s985_s1, %s616_s14  ;;  %p620_p1 = scmp.lt.u32.totalorder %s616_s14, %s985_s1 }
   0x8   :  { %p622_p2 = pnand %p620_p1, %p617_p0 }
   0xa   :  { %625 = shalt.err (!%p622_p2)
}
   0xb   :  { %s626_s19 = scalar_lea.vmem %s40_s26, 128  ;;  %p631_p4 = scmp.lt.s32.totalorder %s40_s26, %s40_s26 }
   0xc   :  { %p627_p3 = scmp.ne.s32.totalorder %s40_s26, %s626_s19  ;;  %p632_p5 = scmp.lt.s32.totalorder %s626_s19, %s626_s19 }
   0xe   :  { %p633_p6 = por %p632_p5, %p631_p4 }
  0x10   :  { %p634_p7 = pnand %p633_p6, %p627_p3 }
  0x12   :  { %637 = shalt.err (!%p634_p7)
}
  0x13   :  { %42 = dma.hbm_to_vmem [thread:$0]  %s985_s1, 128, %s40_s26, [#allocation6]  }
  0x14   :  { %s638_s24 = scalar_lea.hbm %s990_s6, 512 }
  0x15   :  { %p639_p8 = scmp.ne.s32.totalorder %s990_s6, %s638_s24  ;;  %p642_p9 = scmp.lt.u32.totalorder %s638_s24, %s990_s6 }
  0x17   :  { %p644_p10 = pnand %p642_p9, %p639_p8 }
  0x19   :  { %647 = shalt.err (!%p644_p10)
}
  0x1a   :  { %s648_s14 = scalar_lea.vmem %s837_s28, 512  ;;  %p653_p12 = scmp.lt.s32.totalorder %s837_s28, %s837_s28 }
  0x1b   :  { %p649_p11 = scmp.ne.s32.totalorder %s837_s28, %s648_s14  ;;  %p654_p13 = scmp.lt.s32.totalorder %s648_s14, %s648_s14 }
  0x1d   :  { %p655_p0 = por %p654_p13, %p653_p12 }
  0x1f   :  { %p656_p1 = pnand %p655_p0, %p649_p11 }
  0x21   :  { %659 = shalt.err (!%p656_p1)
}
  0x22   :  { %s758_s1 = smov 64   ;;  %s759_s26 = smov 4  }
  0x23   :  { %70 = dma.hbm_to_vmem [thread:$0]  %s990_s6, 512, %s837_s28, [#allocation9], %s758_s1, %s758_s1, %s759_s26  }
  0x24   :  { %s760_s17 = smov [#allocation2]   ;;  %s761_s19 = smov [#allocation7]  }
  0x25   :  { %s29_s18 = sshll.u32 %s760_s17, 4  ;;  %s55_s20 = sshll.u32 %s761_s19, 4  ;;  %s30_s18 = int_to_ptr.vmem [resolvable:$true] %s29_s18  ;;  %s56_s20 = int_to_ptr.vmem [resolvable:$true] %s55_s20 }
  0x26   :  { %s660_s23 = scalar_lea.hbm %s984_s0, 128 }
  0x27   :  { %p661_p2 = scmp.ne.s32.totalorder %s984_s0, %s660_s23  ;;  %p664_p3 = scmp.lt.u32.totalorder %s660_s23, %s984_s0 }
  0x29   :  { %p666_p4 = pnand %p664_p3, %p661_p2 }
  0x2b   :  { %669 = shalt.err (!%p666_p4)
}
  0x2c   :  { %s670_s6 = scalar_lea.vmem %s30_s18, 128  ;;  %p675_p6 = scmp.lt.s32.totalorder %s30_s18, %s30_s18 }
  0x2d   :  { %p671_p5 = scmp.ne.s32.totalorder %s30_s18, %s670_s6  ;;  %p676_p7 = scmp.lt.s32.totalorder %s670_s6, %s670_s6 }
  0x2f   :  { %p677_p8 = por %p676_p7, %p675_p6 }
  0x31   :  { %p678_p9 = pnand %p677_p8, %p671_p5 }
  0x33   :  { %681 = shalt.err (!%p678_p9)
}
  0x34   :  { %32 = dma.hbm_to_vmem [thread:$0]  %s984_s0, 128, %s30_s18, [#allocation3]  }
  0x35   :  { %s682_s16 = scalar_lea.hbm %s989_s5, 16 }
  0x36   :  { %p683_p10 = scmp.ne.s32.totalorder %s989_s5, %s682_s16  ;;  %p686_p11 = scmp.lt.u32.totalorder %s682_s16, %s989_s5 }
  0x38   :  { %p688_p12 = pnand %p686_p11, %p683_p10 }
  0x3a   :  { %691 = shalt.err (!%p688_p12)
}
  0x3b   :  { %s692_s23 = scalar_lea.vmem %s56_s20, 16  ;;  %s696_s24 = scalar_lea.vmem %s56_s20, 32 }
  0x3c   :  { %p693_p13 = scmp.ne.s32.totalorder %s56_s20, %s692_s23  ;;  %p697_p0 = scmp.lt.s32.totalorder %s56_s20, %s56_s20 }
  0x3d   :  { %p698_p1 = scmp.lt.s32.totalorder %s696_s24, %s692_s23 }
  0x3f   :  { %p699_p2 = por %p698_p1, %p697_p0 }
  0x41   :  { %p700_p3 = pnand %p699_p2, %p693_p13 }
  0x43   :  { %703 = shalt.err (!%p700_p3)
}
  0x44   :  { %58 = dma.hbm_to_vmem [thread:$0]  %s989_s5, 16, %s56_s20, [#allocation6]  }
  0x45   :  { %s762_s25 = smov [#allocation10]   ;;  %s704_s28 = scalar_lea.hbm %s993_s9, 1024 }
  0x46   :  { %s80_s27 = sshll.u32 %s762_s25, 4  ;;  %p705_p4 = scmp.ne.s32.totalorder %s993_s9, %s704_s28  ;;  %s81_s27 = int_to_ptr.vmem [resolvable:$true] %s80_s27 }
  0x47   :  { %p708_p5 = scmp.lt.u32.totalorder %s704_s28, %s993_s9 }
  0x49   :  { %p710_p6 = pnand %p708_p5, %p705_p4 }
  0x4b   :  { %713 = shalt.err (!%p710_p6)
}
  0x4c   :  { %s714_s17 = scalar_lea.vmem %s81_s27, 1024  ;;  %p719_p8 = scmp.lt.s32.totalorder %s81_s27, %s81_s27 }
  0x4d   :  { %p715_p7 = scmp.ne.s32.totalorder %s81_s27, %s714_s17  ;;  %p720_p9 = scmp.lt.s32.totalorder %s714_s17, %s714_s17 }
  0x4f   :  { %p721_p10 = por %p720_p9, %p719_p8 }
  0x51   :  { %p722_p11 = pnand %p721_p10, %p715_p7 }
  0x53   :  { %725 = shalt.err (!%p722_p11)
}
  0x54   :  { %86 = dma.hbm_to_vmem [thread:$0]  %s993_s9, 1024, %s81_s27, [#allocation9], %s758_s1, %s758_s1, %s759_s26  }
  0x55   :  { %748 = dma.done.wait [#allocation3], 128  }
  0x56   :  { %749 = vsyncadd [#allocation3], 4294967168 }
  0x57   :  { %750 = dma.done.wait [#allocation6], 144  }
  0x58   :  { %751 = vsyncadd [#allocation6], 4294967152 }
  0x59   :  { %752 = dma.done.wait [#allocation9], 1536  }
  0x5a   :  { %753 = vsyncadd [#allocation9], 4294965760  ;;  %vm109_vm0 = vcmask 523264   ;;  %v107_v0 = vld [vmem:[#allocation2] sm:$0xff]  ;;  %v108_v1 = vld [vmem:[#allocation5] sm:$0xff]  ;;  %v763_v15 = vmov 0.0  }
  0x5b   :  { %v110_v2 = vsel %vm109_vm0, %v107_v0, 0.0  ;;  %v113_v3 = vsel %vm109_vm0, %v108_v1, 0.0  ;;  %v594_v14 = vld [vmem:[%s991_s7] sm:$0xff]   ;;  %537 = vmatprep.subr.bf16.mxu1 %v763_v15  ;;  %561 = vmatprep.subr.bf16.mxu0 %v763_v15  ;;  %v595_v16 = vld [vmem:[%s991_s7 + $0x8] sm:$0xff]   ;;  %v596_v17 = vld [vmem:[%s991_s7 + $0x10] sm:$0xff]   ;;  %vm764_vm1 = vmmov 0  }
  0x5c   :  { %111 = vadd.xlane.f32.xlu0 %v110_v2  ;;  %538 = vmatpush3.bf16.msra.mxu1 %v594_v14  ;;  %v597_v18 = vld [vmem:[%s991_s7 + $0x18] sm:$0xff]   ;;  %v495_v27 = vld [vmem:[%s987_s3] ss:$0 sm:$0xff]  ;;  %v496_v29 = vld [vmem:[#allocation7] ss:$0 sm:$0xff]  ;;  %v765_v50 = vmov 0  }
  0x5d   :  { %539 = vmatprep.subr.bf16.mxu1 %v763_v15  ;;  %545 = vmatprep.mubr.msk.bf16.mxu1 %vm764_vm1, %v763_v15  ;;  %v602_v19 = vld [vmem:[#allocation10] sm:$0xff]   ;;  %v603_v20 = vld [vmem:[#allocation10 + $0x8] sm:$0xff]   ;;  %v600_v37 = vld [vmem:[#allocation8 + $0x10] sm:$0xff]  }
  0x5e   :  { %577 = vmatprep.mubr.msk.bf16.mxu0 %vm764_vm1, %v763_v15  ;;  %562 = vmatpush3.bf16.msra.mxu0 %v602_v19  ;;  %v598_v32 = vld [vmem:[#allocation8] sm:$0xff]   ;;  %v599_v34 = vld [vmem:[#allocation8 + $0x8] sm:$0xff]   ;;  %v601_v40 = vld [vmem:[#allocation8 + $0x18] sm:$0xff]  }
  0x5f   :  { %563 = vmatprep.subr.bf16.mxu0 %v763_v15  ;;  %v493_v36 = vld [vmem:[%s986_s2] ss:$0 sm:$0xff]  ;;  %v604_v43 = vld [vmem:[#allocation10 + $0x10] sm:$0xff]   ;;  %v605_v44 = vld [vmem:[#allocation10 + $0x18] sm:$0xff]   ;;  %592 = vset.pattern.permute.xlu1 %v765_v50 }
  0x60   :  { %114 = vadd.xlane.f32.xlu0 %v113_v3  ;;  %540 = vmatpush3.bf16.msra.mxu1 %v595_v16  ;;  %v494_v39 = vld [vmem:[%s988_s4] ss:$0 sm:$0xff]  ;;  %v606_v45 = vld [vmem:[#allocation10 + $0x20] sm:$0xff]   ;;  %v608_v47 = vld [vmem:[#allocation10 + $0x30] sm:$0xff]  }
  0x61   :  { %541 = vmatprep.subr.bf16.mxu1 %v763_v15  ;;  %v607_v46 = vld [vmem:[#allocation10 + $0x28] sm:$0xff]   ;;  %v609_v48 = vld [vmem:[#allocation10 + $0x38] sm:$0xff]   ;;  %593 = vset.pattern.permute.xlu0 %v765_v50 }
  0x62   :  { %564 = vmatpush3.bf16.msra.mxu0 %v603_v20  ;;  %v452_v49 = vld [vmem:[%s995_s11] sm:$0xff] }
  0x63   :  { %565 = vmatprep.subr.bf16.mxu0 %v763_v15  ;;  %v507_v56 = vld [vmem:[%s992_s8] ss:$0 sm:$0xff]  ;;  %s766_s8 = smov [#allocation11]  }
  0x64   :  { %542 = vmatpush3.bf16.msra.mxu1 %v596_v17 }
  0x65   :  { %543 = vmatprep.subr.bf16.mxu1 %v763_v15 }
  0x66   :  { %566 = vmatpush3.bf16.msra.mxu0 %v604_v43 }
  0x67   :  { %567 = vmatprep.subr.bf16.mxu0 %v763_v15 }
  0x68   :  { %544 = vmatpush3.bf16.msra.mxu1 %v597_v18 }
  0x69   :  { %549 = vmatprep.subr.bf16.mxu1 %v763_v15 }
  0x6a   :  { %568 = vmatpush3.bf16.msra.mxu0 %v605_v44 }
  0x6b   :  { %569 = vmatprep.subr.bf16.mxu0 %v763_v15 }
  0x6e   :  { %570 = vmatpush3.bf16.msra.mxu0 %v606_v45 }
  0x6f   :  { %571 = vmatprep.subr.bf16.mxu0 %v763_v15 }
  0x72   :  { %572 = vmatpush3.bf16.msra.mxu0 %v607_v46 }
  0x73   :  { %573 = vmatprep.subr.bf16.mxu0 %v763_v15 }
  0x76   :  { %574 = vmatpush3.bf16.msra.mxu0 %v608_v47 }
  0x77   :  { %575 = vmatprep.subr.bf16.mxu0 %v763_v15 }
  0x7a   :  { %576 = vmatpush3.bf16.msra.mxu0 %v609_v48 }
  0xe9   :  { %v112_v4 = vpop.xlane.xlu0 %111 }
  0xed   :  { %v115_v5 = vpop.xlane.xlu0 %114 }
  0xee   :  { %v116_v6 = vadd.f32 %v115_v5, %v112_v4 }
  0xf0   :  { %v117_v7 = vmul.f32 0.0078125, %v116_v6 }
  0xf2   :  { %v118_v8 = vsub.f32 %v107_v0, %v117_v7  ;;  %v119_v9 = vsub.f32 %v108_v1, %v117_v7  ;;  %v508_v0 = vld [vmem:[%s994_s10] ss:$0 sm:$0xff]  ;;  %s478_s10 = sshll.u32 %s766_s8, 4  ;;  %s479_s10 = int_to_ptr.vmem [resolvable:$true] %s478_s10 }
  0xf3   :  { %s726_s30 = scalar_lea.vmem %s479_s10, 128  ;;  %p731_p13 = scmp.lt.s32.totalorder %s479_s10, %s479_s10 }
  0xf4   :  { %v120_v10 = vmul.f32 %v118_v8, %v118_v8  ;;  %v124_v12 = vmul.f32 %v119_v9, %v119_v9  ;;  %p727_p12 = scmp.ne.s32.totalorder %s479_s10, %s726_s30  ;;  %p732_p0 = scmp.lt.s32.totalorder %s726_s30, %s726_s30 }
  0xf6   :  { %v121_v11 = vsel %vm109_vm0, %v120_v10, 0.0  ;;  %v125_v13 = vsel %vm109_vm0, %v124_v12, 0.0  ;;  %p733_p1 = por %p732_p0, %p731_p13 }
  0xf7   :  { %122 = vadd.xlane.f32.xlu1 %v121_v11 }
  0xf8   :  { %p734_p2 = pnand %p733_p1, %p727_p12 }
  0xfb   :  { %126 = vadd.xlane.f32.xlu1 %v125_v13 }
 0x10c   :  { %454 = vperm.xlu1 %592, %v452_v49  }
 0x184   :  { %v123_v21 = vpop.xlane.xlu1 %122 }
 0x188   :  { %v127_v22 = vpop.xlane.xlu1 %126 }
 0x189   :  { %v128_v23 = vadd.f32 %v127_v22, %v123_v21 }
 0x18b   :  { %v129_v24 = vmul.f32 0.0078125, %v128_v23 }
 0x18c   :  { %v455_v11 = vpop.permute.xlu1 %454 }
 0x18d   :  { %v130_v25 = vadd.f32 1e-05, %v129_v24 }
 0x18f   :  { %610 = vrsqrt.f32 %v130_v25 }
 0x199   :  { %v611_v26 = vpop.eup %610 }
 0x19a   :  { %v149_v28 = vmul.f32 %v611_v26, %v119_v9  ;;  %v132_v35 = vmul.f32 %v611_v26, %v118_v8  ;;  %v450_v9 = vlaneseq }
 0x19c   :  { %v157_v30 = vmul.f32 %v495_v27, %v149_v28  ;;  %v140_v38 = vmul.f32 %v493_v36, %v132_v35  ;;  %v451_v10 = vand.u32 127, %v450_v9 }
 0x19e   :  { %v165_v31 = vadd.f32 %v496_v29, %v157_v30  ;;  %v148_v41 = vadd.f32 %v494_v39, %v140_v38  ;;  %vm456_vm2 = vcmp.eq.s32.totalorder %v451_v10, %v455_v11 }
 0x1a0   :  { %v175_v33 = vpack.c.bf16 %v165_v31, %v165_v31  ;;  %v166_v42 = vpack.c.bf16 %v148_v41, %v148_v41 }
 0x1a2   :  { %546 = vmatmul.mubr.msk.bf16.vlgmr.msra.gmra.mrb[0].mxu1 %vm109_vm0, %v175_v33 }
 0x1a3   :  { %550 = vmatpush3.bf16.msra.mxu1 %v598_v32  ;;  %557 = vmatprep.mubr.msk.bf16.mxu1 %vm764_vm1, %v763_v15 }
 0x1a4   :  { %551 = vmatprep.subr.bf16.mxu1 %v763_v15 }
 0x1a7   :  { %552 = vmatpush3.bf16.msra.mxu1 %v599_v34 }
 0x1a8   :  { %553 = vmatprep.subr.bf16.mxu1 %v763_v15 }
 0x1ab   :  { %554 = vmatpush3.bf16.msra.mxu1 %v600_v37 }
 0x1ac   :  { %555 = vmatprep.subr.bf16.mxu1 %v763_v15 }
 0x1af   :  { %556 = vmatpush3.bf16.msra.mxu1 %v601_v40 }
 0x1b2   :  { %558 = vmatmul.mubr.msk.bf16.vlgmr.msra.gmra.mrb[4].mxu1 %vm109_vm0, %v166_v42 }
 0x275   :  { %v245_v51 = vpop.f32.mrb[0].mxu1 }
 0x276   :  { %v547_v52 = vpop.f32.mrb[1].mxu1 }
 0x277   :  { %v248_v53 = vpop.f32.mrb[2].mxu1 }
 0x278   :  { %v548_v54 = vpop.f32.mrb[3].mxu1 }
 0x285   :  { %v312_v55 = vpop.f32.mrb[4].mxu1 }
 0x286   :  { %v313_v57 = vadd.f32 %v312_v55, %v245_v51  ;;  %v559_v58 = vpop.f32.mrb[5].mxu1 }
 0x287   :  { %v315_v59 = vpop.f32.mrb[6].mxu1 }
 0x288   :  { %v325_v60 = vadd.f32 %v507_v56, %v313_v57  ;;  %v560_v61 = vpop.f32.mrb[7].mxu1 }
 0x28a   :  { %v326_v62 = vmax.f32 %v325_v60, 0.0 }
 0x28c   :  { %v327_v63 = vpack.c.bf16 %v326_v62, %v326_v62 }
 0x28e   :  { %578 = vmatmul.mubr.bf16.vlgmr.msra.gmra.mrb[0].mxu0 %v327_v63 }
 0x361   :  { %v433_v1 = vpop.f32.mrb[0].mxu0 }
 0x362   :  { %v434_v2 = vadd.f32 %v508_v0, %v433_v1  ;;  %v579_v3 = vpop.f32.mrb[1].mxu0 }
 0x363   :  { %v436_v4 = vpop.f32.mrb[2].mxu0 }
 0x364   :  { %439 = vst [vmem:[#allocation11] sm:$0xff] %v434_v2  ;;  %440 = vmax.xlane.f32.xlu0 %v434_v2  ;;  %v580_v5 = vpop.f32.mrb[3].mxu0  ;;  %v457_v13 = vsel %vm456_vm2, %v434_v2, 0.0 }
 0x3f1   :  { %v441_v6 = vpop.xlane.xlu0 %440 }
 0x3f2   :  { %v442_v7 = vsub.f32 %v434_v2, %v441_v6 }
 0x3f4   :  { %v443_v8 = vmul.f32 1.442695, %v442_v7 }
 0x3f6   :  { %612 = vpow2.f32 %v443_v8 }
 0x400   :  { %v613_v12 = vpop.eup %612 }
 0x401   :  { %445 = vadd.xlane.f32.xlu0 %v613_v12 }
 0x405   :  { %458 = vadd.xlane.f32.xlu0 %v457_v13 }
 0x406   :  { %737 = shalt.err (!%p734_p2)
}
 0x407   :  { %s738_s16 = scalar_lea.hbm %s996_s12, 128 }
 0x408   :  { %p739_p3 = scmp.ne.s32.totalorder %s996_s12, %s738_s16  ;;  %p742_p4 = scmp.lt.u32.totalorder %s738_s16, %s996_s12 }
 0x40a   :  { %p744_p5 = pnand %p742_p4, %p739_p3 }
 0x40c   :  { %747 = shalt.err (!%p744_p5)
}
 0x40d   :  { %481 = dma.vmem_to_hbm [thread:$0]  %s479_s10, 128, %s996_s12, [#allocation4]   ;;  %v462_v16 = vshrl.u32 %v450_v9, 7  ;;  %vm470_vm4 = vcmask 7168  }
 0x40f   :  { %vm465_vm3 = vcmp.lt.s32.totalorder %v462_v16, 2 }
 0x410   :  { %v517_v20 = vsel %vm465_vm3, 1.0, %v763_v15 }
 0x48e   :  { %v446_v14 = vpop.xlane.xlu0 %445 }
 0x48f   :  { %614 = vlog2.f32 %v446_v14 }
 0x492   :  { %v459_v21 = vpop.xlane.xlu0 %458 }
 0x499   :  { %v615_v17 = vpop.eup %614 }
 0x49a   :  { %v448_v18 = vmul.f32 0.6931472, %v615_v17 }
 0x49c   :  { %v449_v19 = vadd.f32 %v448_v18, %v441_v6 }
 0x49e   :  { %v468_v22 = vsub.f32 %v449_v19, %v459_v21 }
 0x4a0   :  { %v469_v23 = vmul.f32 %v517_v20, %v468_v22 }
 0x4a2   :  { %471 = vst.msk [vmem:[%s997_s13] sm:$0xff] %vm470_vm4, %v469_v23 }
 0x4a3   :  { %754 = dma.done.wait [#allocation4], 128  }
 0x4a4   :  { %755 = vsyncadd [#allocation4], 4294967168 }
 0x4a5   :  { %489 = vsyncpa [#allocation3], 1 }
 0x4a6   :  { %490 = vsyncpa [#allocation6], 1 }
 0x4a7   :  { %491 = vsyncpa [#allocation9], 1 }
 0x4a8   :  { %492 = vsyncpa [#allocation4], 1 }

</bundles_post_ra>
